<compile_context>
chip_gen: v7x
topology: tpu7x:2x2x1
jax: 0.10.0
libtpu: 0.0.40
codegen_flags: <defaults>
</compile_context>

<pallas_src>
import functools

import jax
import jax.numpy as jnp
from jax import lax
from jax.experimental import pallas as pl
from jax.experimental.pallas import tpu as pltpu

EPS = 1e-5
PREC_F32 = lax.Precision.HIGHEST  # reference only


def _residual_layer_kernel(
    x_ref, ty_ref, wb1_ref, wb2_ref, wa_ref, vec_ref,
    o_ref,
    pad_ref,
    *, H, W, C, G, B,
):
    WC = W * C
    HW = H * W
    Cg = C // G
    f32 = jnp.float32

    # Vertical zero-padding rows: full lane-dense row stores (the horizontal
    # padding is folded into the banded weight matrices, so there are no
    # masked 1-px column stores at all).  Re-done each step so the kernel is
    # correct under a "parallel" grid axis.
    pad_ref[:, 0:1, :] = jnp.zeros((B, 1, WC), pad_ref.dtype)
    pad_ref[:, H + 1:H + 2, :] = jnp.zeros((B, 1, WC), pad_ref.dtype)

    def silu(z):
        return z * jax.nn.sigmoid(z)

    def image_row_sums(a2):                      # (B*H, WC) -> (B, WC), per image
        return jnp.concatenate(
            [jnp.sum(a2[b * H:(b + 1) * H, :], axis=0, keepdims=True)
             for b in range(B)], axis=0)

    def per_channel(v):                          # (B, W*C) -> (B, C): sum over W
        acc = v[:, 0:C]
        for w in range(1, W):
            acc = acc + v[:, w * C:(w + 1) * C]
        return acc

    def per_group(v):                            # (B, C) -> (B, G)
        if Cg == 1:
            return v
        return jnp.concatenate(
            [jnp.sum(v[:, g * Cg:(g + 1) * Cg], axis=1, keepdims=True)
             for g in range(G)], axis=1)

    def group_to_channel(v):                     # (B, G) -> (B, C)
        if Cg == 1:
            return v
        return jnp.concatenate(
            [jnp.broadcast_to(v[:, g:g + 1], (B, Cg)) for g in range(G)], axis=1)

    def lane_tile(v):                            # (B, C) -> (B, W*C) (w*C + c layout)
        return jnp.concatenate([v] * W, axis=1)

    def conv_gn_silu(wb_ref, bias_row, gamma_row, beta_row):
        # 3x3 conv as three accumulating lane-dense matmuls (one per vertical
        # tap) against banded (W*C, W*C) bf16 weight matrices.
        acc = jnp.dot(pad_ref[:, 0:H, :].reshape(B * H, WC), wb_ref[0],
                      preferred_element_type=f32)
        acc = acc + jnp.dot(pad_ref[:, 1:H + 1, :].reshape(B * H, WC), wb_ref[1],
                            preferred_element_type=f32)
        acc = acc + jnp.dot(pad_ref[:, 2:H + 2, :].reshape(B * H, WC), wb_ref[2],
                            preferred_element_type=f32)
        acc = acc + bias_row                               # (1, WC) broadcast

        # GroupNorm stats (per image, per group) on the VPU/XLU -- no MXU.
        s1 = per_channel(image_row_sums(acc))              # (B, C)
        s2 = per_channel(image_row_sums(acc * acc))        # (B, C)
        n = float(HW * Cg)
        mean_g = per_group(s1) / n                         # (B, G)
        msq_g = per_group(s2) / n
        var_g = jnp.maximum(msq_g - mean_g * mean_g, 0.0)  # clamp: no negative var
        inv_g = lax.rsqrt(var_g + EPS)

        mean_l = lane_tile(group_to_channel(mean_g))       # (B, WC)
        inv_l = lane_tile(group_to_channel(inv_g))         # (B, WC)
        scale = inv_l * gamma_row                          # (B, WC)
        shift = beta_row - mean_l * scale                  # (B, WC)

        acc3 = acc.reshape(B, H, WC)
        return silu(acc3 * scale[:, None, :] + shift[:, None, :])   # (B, H, WC) f32

    x = x_ref[...]                                         # (B, H, W*C) f32

    # ---- block1: conv3x3(pad=1) + GroupNorm + SiLU ---------------------------
    pad_ref[:, 1:H + 1, :] = x.astype(pad_ref.dtype)
    h = conv_gn_silu(wb1_ref, vec_ref[0:1, :], vec_ref[1:2, :], vec_ref[2:3, :])

    # ---- fused time/label adapter: SiLU -> single Linear, broadcast over H,W -
    ty = ty_ref[...][:, 0, :]                              # (B, Td+Yd) f32
    add_row = jnp.dot(silu(ty).astype(jnp.bfloat16), wa_ref[...],
                      preferred_element_type=f32) + vec_ref[6:7, :]   # (B, WC)
    h = h + add_row[:, None, :]

    # ---- block2: conv3x3(pad=1) + GroupNorm + SiLU ---------------------------
    pad_ref[:, 1:H + 1, :] = h.astype(pad_ref.dtype)
    h = conv_gn_silu(wb2_ref, vec_ref[3:4, :], vec_ref[4:5, :], vec_ref[5:6, :])

    # ---- residual add, lane-dense store --------------------------------------
    o_ref[...] = (h + x).astype(o_ref.dtype)


def residual_layer_forward(x_nchw, t_embed, y_embed, params, *,
                           num_groups=8, images_per_step=None):
    """Pallas forward. x_nchw: (bs, C, H, W); t_embed: (bs, Td); y_embed: (bs, Yd)."""
    bs, C, H, W = x_nchw.shape
    Td = t_embed.shape[1]
    Yd = y_embed.shape[1]
    G = num_groups
    WC = W * C
    TY = Td + Yd

    # Images per grid step: fold the whole (tiny) batch into one step when
    # bs <= 2; otherwise keep >= 2 steps so the "parallel" grid axis can use
    # both v7x TensorCores, capped to keep per-step VMEM bounded.
    if images_per_step is None:
        images_per_step = bs if bs <= 2 else min(8, pl.cdiv(bs, 2))
    B = max(1, min(images_per_step, bs))
    steps = pl.cdiv(bs, B)
    pbs = steps * B

    # ---- lane-dense activations: (bs, H, W*C) f32 ----------------------------
    # TODO(synk): for a full-model integration keep activations NHWC end-to-end
    # to avoid this host-side NCHW<->NHWC transpose (extra HBM pass at scale).
    x_l = jnp.transpose(x_nchw, (0, 2, 3, 1)).reshape(bs, H, WC).astype(jnp.float32)
    ty = jnp.concatenate([t_embed, y_embed], axis=1).astype(jnp.float32)
    if pbs != bs:
        x_l = jnp.concatenate([x_l, jnp.zeros((pbs - bs, H, WC), jnp.float32)], 0)
        ty = jnp.concatenate([ty, jnp.zeros((pbs - bs, TY), jnp.float32)], 0)
    ty = ty.reshape(pbs, 1, TY)

    # ---- fold each 3x3 conv (incl. horizontal zero padding) into three banded
    #      (W*C, W*C) matrices: Bmat[ky][win*C+cin, w*C+cout] = w[cout,cin,ky,win-w+1]
    def banded(wconv):
        taps = jnp.transpose(wconv, (2, 3, 1, 0)).astype(jnp.float32)   # (ky,kx,cin,cout)
        wi = jnp.arange(W)[:, None]
        wo = jnp.arange(W)[None, :]
        kx = wi - wo + 1                                                 # (W, W)
        valid = ((kx >= 0) & (kx <= 2)).astype(jnp.float32)
        kxc = jnp.clip(kx, 0, 2)
        mats = []
        for ky in range(3):
            g = jnp.take(taps[ky], kxc, axis=0) * valid[:, :, None, None]  # (W,W,cin,cout)
            mats.append(jnp.transpose(g, (0, 2, 1, 3)).reshape(WC, WC))
        return jnp.stack(mats).astype(jnp.bfloat16)                        # (3, WC, WC)

    wb1 = banded(params["conv1_w"])
    wb2 = banded(params["conv2_w"])

    def tile_c(v):  # (C,) -> (1, W*C), w*C + c lane layout
        return jnp.tile(v.reshape(1, C).astype(jnp.float32), (1, W))

    # Fused adapter weight: [silu(t), silu(y)] @ [lt_w.T ; ly_w.T], lane-tiled.
    wa = jnp.concatenate([params["lt_w"].T, params["ly_w"].T], axis=0)      # (TY, C)
    wa = jnp.tile(wa.astype(jnp.float32), (1, W)).astype(jnp.bfloat16)      # (TY, WC)

    # All per-channel vectors folded into one (8, W*C) operand.
    vecs = jnp.concatenate([
        tile_c(params["conv1_b"]), tile_c(params["gn1_g"]), tile_c(params["gn1_b"]),
        tile_c(params["conv2_b"]), tile_c(params["gn2_g"]), tile_c(params["gn2_b"]),
        tile_c(params["lt_b"] + params["ly_b"]),
        jnp.zeros((1, WC), jnp.float32),
    ], axis=0)                                                              # (8, WC)

    kernel = functools.partial(_residual_layer_kernel, H=H, W=W, C=C, G=G, B=B)

    out = pl.pallas_call(
        kernel,
        out_shape=jax.ShapeDtypeStruct((pbs, H, WC), jnp.float32),
        grid_spec=pltpu.PrefetchScalarGridSpec(
            num_scalar_prefetch=0,
            grid=(steps,),
            in_specs=[
                pl.BlockSpec((B, H, WC), lambda s: (s, 0, 0)),      # x (lane-dense)
                pl.BlockSpec((B, 1, TY), lambda s: (s, 0, 0)),      # [t, y] embeds
                pl.BlockSpec((3, WC, WC), lambda s: (0, 0, 0)),     # conv1 banded (bf16)
                pl.BlockSpec((3, WC, WC), lambda s: (0, 0, 0)),     # conv2 banded (bf16)
                pl.BlockSpec((TY, WC), lambda s: (0, 0)),           # fused adapter W (bf16)
                pl.BlockSpec((8, WC), lambda s: (0, 0)),            # folded per-channel vecs
            ],
            out_specs=pl.BlockSpec((B, H, WC), lambda s: (s, 0, 0)),
            scratch_shapes=[pltpu.VMEM((B, H + 2, WC), jnp.bfloat16)],
        ),
        compiler_params=pltpu.CompilerParams(
            dimension_semantics=("parallel",),   # batch blocks are independent
        ),
    )(x_l, ty, wb1, wb2, wa, vecs)

    out = out[:bs].reshape(bs, H, W, C)
    return jnp.transpose(out, (0, 3, 1, 2))                                 # back to NCHW


# ----------------------------- pure-JAX reference -----------------------------
def residual_layer_reference(x, t_embed, y_embed, p, num_groups=8):
    def conv(h, w, b):
        out = lax.conv_general_dilated(
            h, w, (1, 1), ((1, 1), (1, 1)),
            dimension_numbers=("NCHW", "OIHW", "NCHW"), precision=PREC_F32)
        return out + b[None, :, None, None]

    def gn(h, gamma, beta):
        N, C, H, W = h.shape
        hg = h.reshape(N, num_groups, (C // num_groups) * H * W)
        m = hg.mean(-1, keepdims=True)
        v = hg.var(-1, keepdims=True)
        hn = ((hg - m) / jnp.sqrt(v + EPS)).reshape(N, C, H, W)
        return hn * gamma[None, :, None, None] + beta[None, :, None, None]

    silu = lambda z: z * jax.nn.sigmoid(z)

    res = x
    h = silu(gn(conv(x, p["conv1_w"], p["conv1_b"]), p["gn1_g"], p["gn1_b"]))
    t_add = jnp.dot(silu(t_embed), p["lt_w"].T, precision=PREC_F32) + p["lt_b"]
    y_add = jnp.dot(silu(y_embed), p["ly_w"].T, precision=PREC_F32) + p["ly_b"]
    h = h + t_add[:, :, None, None] + y_add[:, :, None, None]
    h = silu(gn(conv(h, p["conv2_w"], p["conv2_b"]), p["gn2_g"], p["gn2_b"]))
    return h + res


def init_params(key, C, Td, Yd):
    ks = jax.random.split(key, 10)
    return {
        "conv1_w": jax.random.normal(ks[0], (C, C, 3, 3), jnp.float32) * 0.1,
        "conv1_b": jax.random.normal(ks[1], (C,), jnp.float32) * 0.1,
        "gn1_g": 1.0 + 0.1 * jax.random.normal(ks[2], (C,), jnp.float32),
        "gn1_b": 0.1 * jax.random.normal(ks[3], (C,), jnp.float32),
        "conv2_w": jax.random.normal(ks[4], (C, C, 3, 3), jnp.float32) * 0.1,
        "conv2_b": jax.random.normal(ks[5], (C,), jnp.float32) * 0.1,
        "gn2_g": 1.0 + 0.1 * jax.random.normal(ks[6], (C,), jnp.float32),
        "gn2_b": 0.1 * jax.random.normal(ks[7], (C,), jnp.float32),
        "lt_w": jax.random.normal(ks[8], (C, Td), jnp.float32) * 0.1,
        "lt_b": jnp.zeros((C,), jnp.float32),
        "ly_w": jax.random.normal(ks[9], (C, Yd), jnp.float32) * 0.1,
        "ly_b": jnp.zeros((C,), jnp.float32),
    }


if __name__ == "__main__":
    bs, C, H, W = 2, 8, 16, 16          # channels divisible by num_groups=8
    Td, Yd = 32, 16

    key = jax.random.PRNGKey(0)
    k_x, k_t, k_y, k_p = jax.random.split(key, 4)
    x = jax.random.normal(k_x, (bs, C, H, W), jnp.float32)
    t_embed = jax.random.normal(k_t, (bs, Td), jnp.float32)
    y_embed = jax.random.normal(k_y, (bs, Yd), jnp.float32)
    params = init_params(k_p, C, Td, Yd)

    out = residual_layer_forward(x, t_embed, y_embed, params)
    out = jax.block_until_ready(out)

    ref = jax.block_until_ready(residual_layer_reference(x, t_embed, y_embed, params))
    assert out.shape == (bs, C, H, W)
    # Conv / adapter matmuls run in bf16 (full MXU rate, f32 accumulation);
    # reference is full f32, so tolerance reflects bf16 input rounding.
    assert jnp.allclose(out, ref, atol=5e-2, rtol=5e-2), float(jnp.max(jnp.abs(out - ref)))

    print("KERNEL_OK")
</pallas_src>

<mosaic_0001>
module attributes {stable_mosaic.version = 11 : i64} {
  func.func @_residual_layer_kernel(%arg0: i32, %arg1: memref<2x16x128xf32, #tpu.memory_space<vmem>>, %arg2: memref<2x1x48xf32, #tpu.memory_space<vmem>>, %arg3: memref<3x128x128xbf16, #tpu.memory_space<vmem>>, %arg4: memref<3x128x128xbf16, #tpu.memory_space<vmem>>, %arg5: memref<48x128xbf16, #tpu.memory_space<vmem>>, %arg6: memref<8x128xf32, #tpu.memory_space<vmem>>, %arg7: memref<2x16x128xf32, #tpu.memory_space<vmem>>, %arg8: memref<2x18x128xbf16, #tpu.memory_space<vmem>>) attributes {dimension_semantics = [#tpu.dimension_semantics<parallel>], iteration_bounds = array<i64: 1>, scalar_prefetch = 0 : i64, scratch_operands = 1 : i64, tpu.core_type = #tpu.core_type<tc>, window_params = [{transform_indices = @transform_0, window_bounds = array<i64: 2, 16, 128>}, {transform_indices = @transform_1, window_bounds = array<i64: 2, 1, 48>}, {pipeline_mode = #tpu.pipeline_mode<synchronous>, transform_indices = @transform_2, window_bounds = array<i64: 3, 128, 128>}, {pipeline_mode = #tpu.pipeline_mode<synchronous>, transform_indices = @transform_3, window_bounds = array<i64: 3, 128, 128>}, {pipeline_mode = #tpu.pipeline_mode<synchronous>, transform_indices = @transform_4, window_bounds = array<i64: 48, 128>}, {pipeline_mode = #tpu.pipeline_mode<synchronous>, transform_indices = @transform_5, window_bounds = array<i64: 8, 128>}, {transform_indices = @transform_6, window_bounds = array<i64: 2, 16, 128>}]} {
    %cst = arith.constant 0.000000e+00 : bf16
    %0 = vector.broadcast %cst : bf16 to vector<2x1x128xbf16>
    %c0 = arith.constant 0 : index
    %c0_0 = arith.constant 0 : index
    %c0_1 = arith.constant 0 : index
    %1 = vector.load %arg8[%c0, %c0_0, %c0_1] : memref<2x18x128xbf16, #tpu.memory_space<vmem>>, vector<2x1x128xbf16>
    tpu.vector_store %arg8[%c0, %c0_0, %c0_1], %0 {strides = array<i32>} : memref<2x18x128xbf16, #tpu.memory_space<vmem>>, vector<2x1x128xbf16>,
    %cst_2 = arith.constant 0.000000e+00 : bf16
    %2 = vector.broadcast %cst_2 : bf16 to vector<2x1x128xbf16>
    %c0_3 = arith.constant 0 : index
    %c17 = arith.constant 17 : index
    %c0_4 = arith.constant 0 : index
    %3 = vector.load %arg8[%c0_3, %c17, %c0_4] : memref<2x18x128xbf16, #tpu.memory_space<vmem>>, vector<2x1x128xbf16>
    tpu.vector_store %arg8[%c0_3, %c17, %c0_4], %2 {strides = array<i32>} : memref<2x18x128xbf16, #tpu.memory_space<vmem>>, vector<2x1x128xbf16>,
    %c0_5 = arith.constant 0 : index
    %c0_6 = arith.constant 0 : index
    %c0_7 = arith.constant 0 : index
    %4 = vector.load %arg1[%c0_5, %c0_6, %c0_7] : memref<2x16x128xf32, #tpu.memory_space<vmem>>, vector<2x16x128xf32>
    %5 = arith.truncf %4 : vector<2x16x128xf32> to vector<2x16x128xbf16>
    %c0_8 = arith.constant 0 : index
    %c1 = arith.constant 1 : index
    %c0_9 = arith.constant 0 : index
    %6 = vector.load %arg8[%c0_8, %c1, %c0_9] : memref<2x18x128xbf16, #tpu.memory_space<vmem>>, vector<2x16x128xbf16>
    tpu.vector_store %arg8[%c0_8, %c1, %c0_9], %5 {strides = array<i32>} : memref<2x18x128xbf16, #tpu.memory_space<vmem>>, vector<2x16x128xbf16>,
    %c0_10 = arith.constant 0 : index
    %c0_11 = arith.constant 0 : index
    %7 = vector.load %arg6[%c0_10, %c0_11] : memref<8x128xf32, #tpu.memory_space<vmem>>, vector<1x128xf32>
    %c1_12 = arith.constant 1 : index
    %c0_13 = arith.constant 0 : index
    %8 = vector.load %arg6[%c1_12, %c0_13] : memref<8x128xf32, #tpu.memory_space<vmem>>, vector<1x128xf32>
    %c2 = arith.constant 2 : index
    %c0_14 = arith.constant 0 : index
    %9 = vector.load %arg6[%c2, %c0_14] : memref<8x128xf32, #tpu.memory_space<vmem>>, vector<1x128xf32>
    %c0_15 = arith.constant 0 : index
    %c0_16 = arith.constant 0 : index
    %c0_17 = arith.constant 0 : index
    %10 = vector.load %arg8[%c0_15, %c0_16, %c0_17] : memref<2x18x128xbf16, #tpu.memory_space<vmem>>, vector<2x16x128xbf16>
    %11 = vector.shape_cast %10 : vector<2x16x128xbf16> to vector<32x128xbf16>
    %c0_18 = arith.constant 0 : index
    %c0_19 = arith.constant 0 : index
    %c0_20 = arith.constant 0 : index
    %12 = vector.load %arg3[%c0_18, %c0_19, %c0_20] : memref<3x128x128xbf16, #tpu.memory_space<vmem>>, vector<1x128x128xbf16>
    %13 = vector.shape_cast %12 : vector<1x128x128xbf16> to vector<128x128xbf16>
    %cst_21 = arith.constant dense<0.000000e+00> : vector<32x128xf32>
    %14 = tpu.matmul %11, %13, %cst_21 {dimension_numbers = #tpu.dot_dimension_numbers<[1], [0], [0], [1], [0, 0, 1, 1], [], []>} : vector<32x128xbf16>, vector<128x128xbf16>, vector<32x128xf32> -> vector<32x128xf32>
    %c0_22 = arith.constant 0 : index
    %c1_23 = arith.constant 1 : index
    %c0_24 = arith.constant 0 : index
    %15 = vector.load %arg8[%c0_22, %c1_23, %c0_24] : memref<2x18x128xbf16, #tpu.memory_space<vmem>>, vector<2x16x128xbf16>
    %16 = vector.shape_cast %15 : vector<2x16x128xbf16> to vector<32x128xbf16>
    %c1_25 = arith.constant 1 : index
    %c0_26 = arith.constant 0 : index
    %c0_27 = arith.constant 0 : index
    %17 = vector.load %arg3[%c1_25, %c0_26, %c0_27] : memref<3x128x128xbf16, #tpu.memory_space<vmem>>, vector<1x128x128xbf16>
    %18 = vector.shape_cast %17 : vector<1x128x128xbf16> to vector<128x128xbf16>
    %cst_28 = arith.constant dense<0.000000e+00> : vector<32x128xf32>
    %19 = tpu.matmul %16, %18, %cst_28 {dimension_numbers = #tpu.dot_dimension_numbers<[1], [0], [0], [1], [0, 0, 1, 1], [], []>} : vector<32x128xbf16>, vector<128x128xbf16>, vector<32x128xf32> -> vector<32x128xf32>
    %20 = arith.addf %14, %19 : vector<32x128xf32>
    %c0_29 = arith.constant 0 : index
    %c2_30 = arith.constant 2 : index
    %c0_31 = arith.constant 0 : index
    %21 = vector.load %arg8[%c0_29, %c2_30, %c0_31] : memref<2x18x128xbf16, #tpu.memory_space<vmem>>, vector<2x16x128xbf16>
    %22 = vector.shape_cast %21 : vector<2x16x128xbf16> to vector<32x128xbf16>
    %c2_32 = arith.constant 2 : index
    %c0_33 = arith.constant 0 : index
    %c0_34 = arith.constant 0 : index
    %23 = vector.load %arg3[%c2_32, %c0_33, %c0_34] : memref<3x128x128xbf16, #tpu.memory_space<vmem>>, vector<1x128x128xbf16>
    %24 = vector.shape_cast %23 : vector<1x128x128xbf16> to vector<128x128xbf16>
    %cst_35 = arith.constant dense<0.000000e+00> : vector<32x128xf32>
    %25 = tpu.matmul %22, %24, %cst_35 {dimension_numbers = #tpu.dot_dimension_numbers<[1], [0], [0], [1], [0, 0, 1, 1], [], []>} : vector<32x128xbf16>, vector<128x128xbf16>, vector<32x128xf32> -> vector<32x128xf32>
    %26 = arith.addf %20, %25 : vector<32x128xf32>
    %27 = vector.broadcast %7 : vector<1x128xf32> to vector<32x128xf32>
    %28 = arith.addf %26, %27 : vector<32x128xf32>
    %29 = vector.extract_strided_slice %28 {offsets = [0, 0], sizes = [16, 128], strides = [1, 1]} : vector<32x128xf32> to vector<16x128xf32>
    %cst_36 = arith.constant dense<0.000000e+00> : vector<128xf32>
    %30 = vector.multi_reduction <add>, %29, %cst_36 [0] : vector<16x128xf32> to vector<128xf32>
    %31 = vector.shape_cast %30 : vector<128xf32> to vector<1x128xf32>
    %32 = vector.extract_strided_slice %28 {offsets = [16, 0], sizes = [16, 128], strides = [1, 1]} : vector<32x128xf32> to vector<16x128xf32>
    %cst_37 = arith.constant dense<0.000000e+00> : vector<128xf32>
    %33 = vector.multi_reduction <add>, %32, %cst_37 [0] : vector<16x128xf32> to vector<128xf32>
    %34 = vector.shape_cast %33 : vector<128xf32> to vector<1x128xf32>
    %35 = tpu.concatenate %31, %34 in 0 : vector<1x128xf32>, vector<1x128xf32> -> vector<2x128xf32>
    %36 = vector.extract_strided_slice %35 {offsets = [0, 0], sizes = [2, 8], strides = [1, 1]} : vector<2x128xf32> to vector<2x8xf32>
    %37 = vector.extract_strided_slice %35 {offsets = [0, 8], sizes = [2, 8], strides = [1, 1]} : vector<2x128xf32> to vector<2x8xf32>
    %38 = arith.addf %36, %37 : vector<2x8xf32>
    %39 = vector.extract_strided_slice %35 {offsets = [0, 16], sizes = [2, 8], strides = [1, 1]} : vector<2x128xf32> to vector<2x8xf32>
    %40 = arith.addf %38, %39 : vector<2x8xf32>
    %41 = vector.extract_strided_slice %35 {offsets = [0, 24], sizes = [2, 8], strides = [1, 1]} : vector<2x128xf32> to vector<2x8xf32>
    %42 = arith.addf %40, %41 : vector<2x8xf32>
    %43 = vector.extract_strided_slice %35 {offsets = [0, 32], sizes = [2, 8], strides = [1, 1]} : vector<2x128xf32> to vector<2x8xf32>
    %44 = arith.addf %42, %43 : vector<2x8xf32>
    %45 = vector.extract_strided_slice %35 {offsets = [0, 40], sizes = [2, 8], strides = [1, 1]} : vector<2x128xf32> to vector<2x8xf32>
    %46 = arith.addf %44, %45 : vector<2x8xf32>
    %47 = vector.extract_strided_slice %35 {offsets = [0, 48], sizes = [2, 8], strides = [1, 1]} : vector<2x128xf32> to vector<2x8xf32>
    %48 = arith.addf %46, %47 : vector<2x8xf32>
    %49 = vector.extract_strided_slice %35 {offsets = [0, 56], sizes = [2, 8], strides = [1, 1]} : vector<2x128xf32> to vector<2x8xf32>
    %50 = arith.addf %48, %49 : vector<2x8xf32>
    %51 = vector.extract_strided_slice %35 {offsets = [0, 64], sizes = [2, 8], strides = [1, 1]} : vector<2x128xf32> to vector<2x8xf32>
    %52 = arith.addf %50, %51 : vector<2x8xf32>
    %53 = vector.extract_strided_slice %35 {offsets = [0, 72], sizes = [2, 8], strides = [1, 1]} : vector<2x128xf32> to vector<2x8xf32>
    %54 = arith.addf %52, %53 : vector<2x8xf32>
    %55 = vector.extract_strided_slice %35 {offsets = [0, 80], sizes = [2, 8], strides = [1, 1]} : vector<2x128xf32> to vector<2x8xf32>
    %56 = arith.addf %54, %55 : vector<2x8xf32>
    %57 = vector.extract_strided_slice %35 {offsets = [0, 88], sizes = [2, 8], strides = [1, 1]} : vector<2x128xf32> to vector<2x8xf32>
    %58 = arith.addf %56, %57 : vector<2x8xf32>
    %59 = vector.extract_strided_slice %35 {offsets = [0, 96], sizes = [2, 8], strides = [1, 1]} : vector<2x128xf32> to vector<2x8xf32>
    %60 = arith.addf %58, %59 : vector<2x8xf32>
    %61 = vector.extract_strided_slice %35 {offsets = [0, 104], sizes = [2, 8], strides = [1, 1]} : vector<2x128xf32> to vector<2x8xf32>
    %62 = arith.addf %60, %61 : vector<2x8xf32>
    %63 = vector.extract_strided_slice %35 {offsets = [0, 112], sizes = [2, 8], strides = [1, 1]} : vector<2x128xf32> to vector<2x8xf32>
    %64 = arith.addf %62, %63 : vector<2x8xf32>
    %65 = vector.extract_strided_slice %35 {offsets = [0, 120], sizes = [2, 8], strides = [1, 1]} : vector<2x128xf32> to vector<2x8xf32>
    %66 = arith.addf %64, %65 : vector<2x8xf32>
    %67 = arith.mulf %28, %28 : vector<32x128xf32>
    %68 = vector.extract_strided_slice %67 {offsets = [0, 0], sizes = [16, 128], strides = [1, 1]} : vector<32x128xf32> to vector<16x128xf32>
    %cst_38 = arith.constant dense<0.000000e+00> : vector<128xf32>
    %69 = vector.multi_reduction <add>, %68, %cst_38 [0] : vector<16x128xf32> to vector<128xf32>
    %70 = vector.shape_cast %69 : vector<128xf32> to vector<1x128xf32>
    %71 = vector.extract_strided_slice %67 {offsets = [16, 0], sizes = [16, 128], strides = [1, 1]} : vector<32x128xf32> to vector<16x128xf32>
    %cst_39 = arith.constant dense<0.000000e+00> : vector<128xf32>
    %72 = vector.multi_reduction <add>, %71, %cst_39 [0] : vector<16x128xf32> to vector<128xf32>
    %73 = vector.shape_cast %72 : vector<128xf32> to vector<1x128xf32>
    %74 = tpu.concatenate %70, %73 in 0 : vector<1x128xf32>, vector<1x128xf32> -> vector<2x128xf32>
    %75 = vector.extract_strided_slice %74 {offsets = [0, 0], sizes = [2, 8], strides = [1, 1]} : vector<2x128xf32> to vector<2x8xf32>
    %76 = vector.extract_strided_slice %74 {offsets = [0, 8], sizes = [2, 8], strides = [1, 1]} : vector<2x128xf32> to vector<2x8xf32>
    %77 = arith.addf %75, %76 : vector<2x8xf32>
    %78 = vector.extract_strided_slice %74 {offsets = [0, 16], sizes = [2, 8], strides = [1, 1]} : vector<2x128xf32> to vector<2x8xf32>
    %79 = arith.addf %77, %78 : vector<2x8xf32>
    %80 = vector.extract_strided_slice %74 {offsets = [0, 24], sizes = [2, 8], strides = [1, 1]} : vector<2x128xf32> to vector<2x8xf32>
    %81 = arith.addf %79, %80 : vector<2x8xf32>
    %82 = vector.extract_strided_slice %74 {offsets = [0, 32], sizes = [2, 8], strides = [1, 1]} : vector<2x128xf32> to vector<2x8xf32>
    %83 = arith.addf %81, %82 : vector<2x8xf32>
    %84 = vector.extract_strided_slice %74 {offsets = [0, 40], sizes = [2, 8], strides = [1, 1]} : vector<2x128xf32> to vector<2x8xf32>
    %85 = arith.addf %83, %84 : vector<2x8xf32>
    %86 = vector.extract_strided_slice %74 {offsets = [0, 48], sizes = [2, 8], strides = [1, 1]} : vector<2x128xf32> to vector<2x8xf32>
    %87 = arith.addf %85, %86 : vector<2x8xf32>
    %88 = vector.extract_strided_slice %74 {offsets = [0, 56], sizes = [2, 8], strides = [1, 1]} : vector<2x128xf32> to vector<2x8xf32>
    %89 = arith.addf %87, %88 : vector<2x8xf32>
    %90 = vector.extract_strided_slice %74 {offsets = [0, 64], sizes = [2, 8], strides = [1, 1]} : vector<2x128xf32> to vector<2x8xf32>
    %91 = arith.addf %89, %90 : vector<2x8xf32>
    %92 = vector.extract_strided_slice %74 {offsets = [0, 72], sizes = [2, 8], strides = [1, 1]} : vector<2x128xf32> to vector<2x8xf32>
    %93 = arith.addf %91, %92 : vector<2x8xf32>
    %94 = vector.extract_strided_slice %74 {offsets = [0, 80], sizes = [2, 8], strides = [1, 1]} : vector<2x128xf32> to vector<2x8xf32>
    %95 = arith.addf %93, %94 : vector<2x8xf32>
    %96 = vector.extract_strided_slice %74 {offsets = [0, 88], sizes = [2, 8], strides = [1, 1]} : vector<2x128xf32> to vector<2x8xf32>
    %97 = arith.addf %95, %96 : vector<2x8xf32>
    %98 = vector.extract_strided_slice %74 {offsets = [0, 96], sizes = [2, 8], strides = [1, 1]} : vector<2x128xf32> to vector<2x8xf32>
    %99 = arith.addf %97, %98 : vector<2x8xf32>
    %100 = vector.extract_strided_slice %74 {offsets = [0, 104], sizes = [2, 8], strides = [1, 1]} : vector<2x128xf32> to vector<2x8xf32>
    %101 = arith.addf %99, %100 : vector<2x8xf32>
    %102 = vector.extract_strided_slice %74 {offsets = [0, 112], sizes = [2, 8], strides = [1, 1]} : vector<2x128xf32> to vector<2x8xf32>
    %103 = arith.addf %101, %102 : vector<2x8xf32>
    %104 = vector.extract_strided_slice %74 {offsets = [0, 120], sizes = [2, 8], strides = [1, 1]} : vector<2x128xf32> to vector<2x8xf32>
    %105 = arith.addf %103, %104 : vector<2x8xf32>
    %cst_40 = arith.constant 2.560000e+02 : f32
    %106 = vector.broadcast %cst_40 : f32 to vector<2x8xf32>
    %107 = arith.divf %66, %106 : vector<2x8xf32>
    %cst_41 = arith.constant 2.560000e+02 : f32
    %108 = vector.broadcast %cst_41 : f32 to vector<2x8xf32>
    %109 = arith.divf %105, %108 : vector<2x8xf32>
    %110 = arith.mulf %107, %107 : vector<2x8xf32>
    %111 = arith.subf %109, %110 : vector<2x8xf32>
    %cst_42 = arith.constant 0.000000e+00 : f32
    %112 = vector.broadcast %cst_42 : f32 to vector<2x8xf32>
    %113 = arith.maximumf %111, %112 : vector<2x8xf32>
    %cst_43 = arith.constant 9.99999974E-6 : f32
    %114 = vector.broadcast %cst_43 : f32 to vector<2x8xf32>
    %115 = arith.addf %113, %114 : vector<2x8xf32>
    %116 = math.rsqrt %115 : vector<2x8xf32>
    %117 = tpu.concatenate %107, %107, %107, %107, %107, %107, %107, %107, %107, %107, %107, %107, %107, %107, %107, %107 in 1 : vector<2x8xf32>, vector<2x8xf32>, vector<2x8xf32>, vector<2x8xf32>, vector<2x8xf32>, vector<2x8xf32>, vector<2x8xf32>, vector<2x8xf32>, vector<2x8xf32>, vector<2x8xf32>, vector<2x8xf32>, vector<2x8xf32>, vector<2x8xf32>, vector<2x8xf32>, vector<2x8xf32>, vector<2x8xf32> -> vector<2x128xf32>
    %118 = tpu.concatenate %116, %116, %116, %116, %116, %116, %116, %116, %116, %116, %116, %116, %116, %116, %116, %116 in 1 : vector<2x8xf32>, vector<2x8xf32>, vector<2x8xf32>, vector<2x8xf32>, vector<2x8xf32>, vector<2x8xf32>, vector<2x8xf32>, vector<2x8xf32>, vector<2x8xf32>, vector<2x8xf32>, vector<2x8xf32>, vector<2x8xf32>, vector<2x8xf32>, vector<2x8xf32>, vector<2x8xf32>, vector<2x8xf32> -> vector<2x128xf32>
    %119 = vector.broadcast %8 : vector<1x128xf32> to vector<2x128xf32>
    %120 = arith.mulf %118, %119 : vector<2x128xf32>
    %121 = arith.mulf %117, %120 : vector<2x128xf32>
    %122 = vector.broadcast %9 : vector<1x128xf32> to vector<2x128xf32>
    %123 = arith.subf %122, %121 : vector<2x128xf32>
    %124 = vector.shape_cast %28 : vector<32x128xf32> to vector<2x16x128xf32>
    %125 = vector.shape_cast %120 : vector<2x128xf32> to vector<2x1x128xf32>
    %126 = vector.broadcast %125 : vector<2x1x128xf32> to vector<2x16x128xf32>
    %127 = arith.mulf %124, %126 : vector<2x16x128xf32>
    %128 = vector.shape_cast %123 : vector<2x128xf32> to vector<2x1x128xf32>
    %129 = vector.broadcast %128 : vector<2x1x128xf32> to vector<2x16x128xf32>
    %130 = arith.addf %127, %129 : vector<2x16x128xf32>
    %131 = arith.negf %130 : vector<2x16x128xf32>
    %132 = math.exp %131 : vector<2x16x128xf32>
    %cst_44 = arith.constant 1.000000e+00 : f32
    %133 = vector.broadcast %cst_44 : f32 to vector<2x16x128xf32>
    %134 = arith.addf %133, %132 : vector<2x16x128xf32>
    %135 = arith.divf %133, %134 : vector<2x16x128xf32>
    %136 = arith.mulf %130, %135 : vector<2x16x128xf32>
    %c0_45 = arith.constant 0 : index
    %c0_46 = arith.constant 0 : index
    %c0_47 = arith.constant 0 : index
    %137 = vector.load %arg2[%c0_45, %c0_46, %c0_47] : memref<2x1x48xf32, #tpu.memory_space<vmem>>, vector<2x1x48xf32>
    %138 = vector.shape_cast %137 : vector<2x1x48xf32> to vector<2x48xf32>
    %139 = arith.negf %138 : vector<2x48xf32>
    %140 = math.exp %139 : vector<2x48xf32>
    %cst_48 = arith.constant 1.000000e+00 : f32
    %141 = vector.broadcast %cst_48 : f32 to vector<2x48xf32>
    %142 = arith.addf %141, %140 : vector<2x48xf32>
    %143 = arith.divf %141, %142 : vector<2x48xf32>
    %144 = arith.mulf %138, %143 : vector<2x48xf32>
    %145 = arith.truncf %144 : vector<2x48xf32> to vector<2x48xbf16>
    %c0_49 = arith.constant 0 : index
    %c0_50 = arith.constant 0 : index
    %146 = vector.load %arg5[%c0_49, %c0_50] : memref<48x128xbf16, #tpu.memory_space<vmem>>, vector<48x128xbf16>
    %cst_51 = arith.constant dense<0.000000e+00> : vector<2x128xf32>
    %147 = tpu.matmul %145, %146, %cst_51 {dimension_numbers = #tpu.dot_dimension_numbers<[1], [0], [0], [1], [0, 0, 1, 1], [], []>} : vector<2x48xbf16>, vector<48x128xbf16>, vector<2x128xf32> -> vector<2x128xf32>
    %c6 = arith.constant 6 : index
    %c0_52 = arith.constant 0 : index
    %148 = vector.load %arg6[%c6, %c0_52] : memref<8x128xf32, #tpu.memory_space<vmem>>, vector<1x128xf32>
    %149 = vector.broadcast %148 : vector<1x128xf32> to vector<2x128xf32>
    %150 = arith.addf %147, %149 : vector<2x128xf32>
    %151 = vector.shape_cast %150 : vector<2x128xf32> to vector<2x1x128xf32>
    %152 = vector.broadcast %151 : vector<2x1x128xf32> to vector<2x16x128xf32>
    %153 = arith.addf %136, %152 : vector<2x16x128xf32>
    %154 = arith.truncf %153 : vector<2x16x128xf32> to vector<2x16x128xbf16>
    %c0_53 = arith.constant 0 : index
    %c1_54 = arith.constant 1 : index
    %c0_55 = arith.constant 0 : index
    %155 = vector.load %arg8[%c0_53, %c1_54, %c0_55] : memref<2x18x128xbf16, #tpu.memory_space<vmem>>, vector<2x16x128xbf16>
    tpu.vector_store %arg8[%c0_53, %c1_54, %c0_55], %154 {strides = array<i32>} : memref<2x18x128xbf16, #tpu.memory_space<vmem>>, vector<2x16x128xbf16>,
    %c3 = arith.constant 3 : index
    %c0_56 = arith.constant 0 : index
    %156 = vector.load %arg6[%c3, %c0_56] : memref<8x128xf32, #tpu.memory_space<vmem>>, vector<1x128xf32>
    %c4 = arith.constant 4 : index
    %c0_57 = arith.constant 0 : index
    %157 = vector.load %arg6[%c4, %c0_57] : memref<8x128xf32, #tpu.memory_space<vmem>>, vector<1x128xf32>
    %c5 = arith.constant 5 : index
    %c0_58 = arith.constant 0 : index
    %158 = vector.load %arg6[%c5, %c0_58] : memref<8x128xf32, #tpu.memory_space<vmem>>, vector<1x128xf32>
    %c0_59 = arith.constant 0 : index
    %c0_60 = arith.constant 0 : index
    %c0_61 = arith.constant 0 : index
    %159 = vector.load %arg8[%c0_59, %c0_60, %c0_61] : memref<2x18x128xbf16, #tpu.memory_space<vmem>>, vector<2x16x128xbf16>
    %160 = vector.shape_cast %159 : vector<2x16x128xbf16> to vector<32x128xbf16>
    %c0_62 = arith.constant 0 : index
    %c0_63 = arith.constant 0 : index
    %c0_64 = arith.constant 0 : index
    %161 = vector.load %arg4[%c0_62, %c0_63, %c0_64] : memref<3x128x128xbf16, #tpu.memory_space<vmem>>, vector<1x128x128xbf16>
    %162 = vector.shape_cast %161 : vector<1x128x128xbf16> to vector<128x128xbf16>
    %cst_65 = arith.constant dense<0.000000e+00> : vector<32x128xf32>
    %163 = tpu.matmul %160, %162, %cst_65 {dimension_numbers = #tpu.dot_dimension_numbers<[1], [0], [0], [1], [0, 0, 1, 1], [], []>} : vector<32x128xbf16>, vector<128x128xbf16>, vector<32x128xf32> -> vector<32x128xf32>
    %c0_66 = arith.constant 0 : index
    %c1_67 = arith.constant 1 : index
    %c0_68 = arith.constant 0 : index
    %164 = vector.load %arg8[%c0_66, %c1_67, %c0_68] : memref<2x18x128xbf16, #tpu.memory_space<vmem>>, vector<2x16x128xbf16>
    %165 = vector.shape_cast %164 : vector<2x16x128xbf16> to vector<32x128xbf16>
    %c1_69 = arith.constant 1 : index
    %c0_70 = arith.constant 0 : index
    %c0_71 = arith.constant 0 : index
    %166 = vector.load %arg4[%c1_69, %c0_70, %c0_71] : memref<3x128x128xbf16, #tpu.memory_space<vmem>>, vector<1x128x128xbf16>
    %167 = vector.shape_cast %166 : vector<1x128x128xbf16> to vector<128x128xbf16>
    %cst_72 = arith.constant dense<0.000000e+00> : vector<32x128xf32>
    %168 = tpu.matmul %165, %167, %cst_72 {dimension_numbers = #tpu.dot_dimension_numbers<[1], [0], [0], [1], [0, 0, 1, 1], [], []>} : vector<32x128xbf16>, vector<128x128xbf16>, vector<32x128xf32> -> vector<32x128xf32>
    %169 = arith.addf %163, %168 : vector<32x128xf32>
    %c0_73 = arith.constant 0 : index
    %c2_74 = arith.constant 2 : index
    %c0_75 = arith.constant 0 : index
    %170 = vector.load %arg8[%c0_73, %c2_74, %c0_75] : memref<2x18x128xbf16, #tpu.memory_space<vmem>>, vector<2x16x128xbf16>
    %171 = vector.shape_cast %170 : vector<2x16x128xbf16> to vector<32x128xbf16>
    %c2_76 = arith.constant 2 : index
    %c0_77 = arith.constant 0 : index
    %c0_78 = arith.constant 0 : index
    %172 = vector.load %arg4[%c2_76, %c0_77, %c0_78] : memref<3x128x128xbf16, #tpu.memory_space<vmem>>, vector<1x128x128xbf16>
    %173 = vector.shape_cast %172 : vector<1x128x128xbf16> to vector<128x128xbf16>
    %cst_79 = arith.constant dense<0.000000e+00> : vector<32x128xf32>
    %174 = tpu.matmul %171, %173, %cst_79 {dimension_numbers = #tpu.dot_dimension_numbers<[1], [0], [0], [1], [0, 0, 1, 1], [], []>} : vector<32x128xbf16>, vector<128x128xbf16>, vector<32x128xf32> -> vector<32x128xf32>
    %175 = arith.addf %169, %174 : vector<32x128xf32>
    %176 = vector.broadcast %156 : vector<1x128xf32> to vector<32x128xf32>
    %177 = arith.addf %175, %176 : vector<32x128xf32>
    %178 = vector.extract_strided_slice %177 {offsets = [0, 0], sizes = [16, 128], strides = [1, 1]} : vector<32x128xf32> to vector<16x128xf32>
    %cst_80 = arith.constant dense<0.000000e+00> : vector<128xf32>
    %179 = vector.multi_reduction <add>, %178, %cst_80 [0] : vector<16x128xf32> to vector<128xf32>
    %180 = vector.shape_cast %179 : vector<128xf32> to vector<1x128xf32>
    %181 = vector.extract_strided_slice %177 {offsets = [16, 0], sizes = [16, 128], strides = [1, 1]} : vector<32x128xf32> to vector<16x128xf32>
    %cst_81 = arith.constant dense<0.000000e+00> : vector<128xf32>
    %182 = vector.multi_reduction <add>, %181, %cst_81 [0] : vector<16x128xf32> to vector<128xf32>
    %183 = vector.shape_cast %182 : vector<128xf32> to vector<1x128xf32>
    %184 = tpu.concatenate %180, %183 in 0 : vector<1x128xf32>, vector<1x128xf32> -> vector<2x128xf32>
    %185 = vector.extract_strided_slice %184 {offsets = [0, 0], sizes = [2, 8], strides = [1, 1]} : vector<2x128xf32> to vector<2x8xf32>
    %186 = vector.extract_strided_slice %184 {offsets = [0, 8], sizes = [2, 8], strides = [1, 1]} : vector<2x128xf32> to vector<2x8xf32>
    %187 = arith.addf %185, %186 : vector<2x8xf32>
    %188 = vector.extract_strided_slice %184 {offsets = [0, 16], sizes = [2, 8], strides = [1, 1]} : vector<2x128xf32> to vector<2x8xf32>
    %189 = arith.addf %187, %188 : vector<2x8xf32>
    %190 = vector.extract_strided_slice %184 {offsets = [0, 24], sizes = [2, 8], strides = [1, 1]} : vector<2x128xf32> to vector<2x8xf32>
    %191 = arith.addf %189, %190 : vector<2x8xf32>
    %192 = vector.extract_strided_slice %184 {offsets = [0, 32], sizes = [2, 8], strides = [1, 1]} : vector<2x128xf32> to vector<2x8xf32>
    %193 = arith.addf %191, %192 : vector<2x8xf32>
    %194 = vector.extract_strided_slice %184 {offsets = [0, 40], sizes = [2, 8], strides = [1, 1]} : vector<2x128xf32> to vector<2x8xf32>
    %195 = arith.addf %193, %194 : vector<2x8xf32>
    %196 = vector.extract_strided_slice %184 {offsets = [0, 48], sizes = [2, 8], strides = [1, 1]} : vector<2x128xf32> to vector<2x8xf32>
    %197 = arith.addf %195, %196 : vector<2x8xf32>
    %198 = vector.extract_strided_slice %184 {offsets = [0, 56], sizes = [2, 8], strides = [1, 1]} : vector<2x128xf32> to vector<2x8xf32>
    %199 = arith.addf %197, %198 : vector<2x8xf32>
    %200 = vector.extract_strided_slice %184 {offsets = [0, 64], sizes = [2, 8], strides = [1, 1]} : vector<2x128xf32> to vector<2x8xf32>
    %201 = arith.addf %199, %200 : vector<2x8xf32>
    %202 = vector.extract_strided_slice %184 {offsets = [0, 72], sizes = [2, 8], strides = [1, 1]} : vector<2x128xf32> to vector<2x8xf32>
    %203 = arith.addf %201, %202 : vector<2x8xf32>
    %204 = vector.extract_strided_slice %184 {offsets = [0, 80], sizes = [2, 8], strides = [1, 1]} : vector<2x128xf32> to vector<2x8xf32>
    %205 = arith.addf %203, %204 : vector<2x8xf32>
    %206 = vector.extract_strided_slice %184 {offsets = [0, 88], sizes = [2, 8], strides = [1, 1]} : vector<2x128xf32> to vector<2x8xf32>
    %207 = arith.addf %205, %206 : vector<2x8xf32>
    %208 = vector.extract_strided_slice %184 {offsets = [0, 96], sizes = [2, 8], strides = [1, 1]} : vector<2x128xf32> to vector<2x8xf32>
    %209 = arith.addf %207, %208 : vector<2x8xf32>
    %210 = vector.extract_strided_slice %184 {offsets = [0, 104], sizes = [2, 8], strides = [1, 1]} : vector<2x128xf32> to vector<2x8xf32>
    %211 = arith.addf %209, %210 : vector<2x8xf32>
    %212 = vector.extract_strided_slice %184 {offsets = [0, 112], sizes = [2, 8], strides = [1, 1]} : vector<2x128xf32> to vector<2x8xf32>
    %213 = arith.addf %211, %212 : vector<2x8xf32>
    %214 = vector.extract_strided_slice %184 {offsets = [0, 120], sizes = [2, 8], strides = [1, 1]} : vector<2x128xf32> to vector<2x8xf32>
    %215 = arith.addf %213, %214 : vector<2x8xf32>
    %216 = arith.mulf %177, %177 : vector<32x128xf32>
    %217 = vector.extract_strided_slice %216 {offsets = [0, 0], sizes = [16, 128], strides = [1, 1]} : vector<32x128xf32> to vector<16x128xf32>
    %cst_82 = arith.constant dense<0.000000e+00> : vector<128xf32>
    %218 = vector.multi_reduction <add>, %217, %cst_82 [0] : vector<16x128xf32> to vector<128xf32>
    %219 = vector.shape_cast %218 : vector<128xf32> to vector<1x128xf32>
    %220 = vector.extract_strided_slice %216 {offsets = [16, 0], sizes = [16, 128], strides = [1, 1]} : vector<32x128xf32> to vector<16x128xf32>
    %cst_83 = arith.constant dense<0.000000e+00> : vector<128xf32>
    %221 = vector.multi_reduction <add>, %220, %cst_83 [0] : vector<16x128xf32> to vector<128xf32>
    %222 = vector.shape_cast %221 : vector<128xf32> to vector<1x128xf32>
    %223 = tpu.concatenate %219, %222 in 0 : vector<1x128xf32>, vector<1x128xf32> -> vector<2x128xf32>
    %224 = vector.extract_strided_slice %223 {offsets = [0, 0], sizes = [2, 8], strides = [1, 1]} : vector<2x128xf32> to vector<2x8xf32>
    %225 = vector.extract_strided_slice %223 {offsets = [0, 8], sizes = [2, 8], strides = [1, 1]} : vector<2x128xf32> to vector<2x8xf32>
    %226 = arith.addf %224, %225 : vector<2x8xf32>
    %227 = vector.extract_strided_slice %223 {offsets = [0, 16], sizes = [2, 8], strides = [1, 1]} : vector<2x128xf32> to vector<2x8xf32>
    %228 = arith.addf %226, %227 : vector<2x8xf32>
    %229 = vector.extract_strided_slice %223 {offsets = [0, 24], sizes = [2, 8], strides = [1, 1]} : vector<2x128xf32> to vector<2x8xf32>
    %230 = arith.addf %228, %229 : vector<2x8xf32>
    %231 = vector.extract_strided_slice %223 {offsets = [0, 32], sizes = [2, 8], strides = [1, 1]} : vector<2x128xf32> to vector<2x8xf32>
    %232 = arith.addf %230, %231 : vector<2x8xf32>
    %233 = vector.extract_strided_slice %223 {offsets = [0, 40], sizes = [2, 8], strides = [1, 1]} : vector<2x128xf32> to vector<2x8xf32>
    %234 = arith.addf %232, %233 : vector<2x8xf32>
    %235 = vector.extract_strided_slice %223 {offsets = [0, 48], sizes = [2, 8], strides = [1, 1]} : vector<2x128xf32> to vector<2x8xf32>
    %236 = arith.addf %234, %235 : vector<2x8xf32>
    %237 = vector.extract_strided_slice %223 {offsets = [0, 56], sizes = [2, 8], strides = [1, 1]} : vector<2x128xf32> to vector<2x8xf32>
    %238 = arith.addf %236, %237 : vector<2x8xf32>
    %239 = vector.extract_strided_slice %223 {offsets = [0, 64], sizes = [2, 8], strides = [1, 1]} : vector<2x128xf32> to vector<2x8xf32>
    %240 = arith.addf %238, %239 : vector<2x8xf32>
    %241 = vector.extract_strided_slice %223 {offsets = [0, 72], sizes = [2, 8], strides = [1, 1]} : vector<2x128xf32> to vector<2x8xf32>
    %242 = arith.addf %240, %241 : vector<2x8xf32>
    %243 = vector.extract_strided_slice %223 {offsets = [0, 80], sizes = [2, 8], strides = [1, 1]} : vector<2x128xf32> to vector<2x8xf32>
    %244 = arith.addf %242, %243 : vector<2x8xf32>
    %245 = vector.extract_strided_slice %223 {offsets = [0, 88], sizes = [2, 8], strides = [1, 1]} : vector<2x128xf32> to vector<2x8xf32>
    %246 = arith.addf %244, %245 : vector<2x8xf32>
    %247 = vector.extract_strided_slice %223 {offsets = [0, 96], sizes = [2, 8], strides = [1, 1]} : vector<2x128xf32> to vector<2x8xf32>
    %248 = arith.addf %246, %247 : vector<2x8xf32>
    %249 = vector.extract_strided_slice %223 {offsets = [0, 104], sizes = [2, 8], strides = [1, 1]} : vector<2x128xf32> to vector<2x8xf32>
    %250 = arith.addf %248, %249 : vector<2x8xf32>
    %251 = vector.extract_strided_slice %223 {offsets = [0, 112], sizes = [2, 8], strides = [1, 1]} : vector<2x128xf32> to vector<2x8xf32>
    %252 = arith.addf %250, %251 : vector<2x8xf32>
    %253 = vector.extract_strided_slice %223 {offsets = [0, 120], sizes = [2, 8], strides = [1, 1]} : vector<2x128xf32> to vector<2x8xf32>
    %254 = arith.addf %252, %253 : vector<2x8xf32>
    %cst_84 = arith.constant 2.560000e+02 : f32
    %255 = vector.broadcast %cst_84 : f32 to vector<2x8xf32>
    %256 = arith.divf %215, %255 : vector<2x8xf32>
    %cst_85 = arith.constant 2.560000e+02 : f32
    %257 = vector.broadcast %cst_85 : f32 to vector<2x8xf32>
    %258 = arith.divf %254, %257 : vector<2x8xf32>
    %259 = arith.mulf %256, %256 : vector<2x8xf32>
    %260 = arith.subf %258, %259 : vector<2x8xf32>
    %cst_86 = arith.constant 0.000000e+00 : f32
    %261 = vector.broadcast %cst_86 : f32 to vector<2x8xf32>
    %262 = arith.maximumf %260, %261 : vector<2x8xf32>
    %cst_87 = arith.constant 9.99999974E-6 : f32
    %263 = vector.broadcast %cst_87 : f32 to vector<2x8xf32>
    %264 = arith.addf %262, %263 : vector<2x8xf32>
    %265 = math.rsqrt %264 : vector<2x8xf32>
    %266 = tpu.concatenate %256, %256, %256, %256, %256, %256, %256, %256, %256, %256, %256, %256, %256, %256, %256, %256 in 1 : vector<2x8xf32>, vector<2x8xf32>, vector<2x8xf32>, vector<2x8xf32>, vector<2x8xf32>, vector<2x8xf32>, vector<2x8xf32>, vector<2x8xf32>, vector<2x8xf32>, vector<2x8xf32>, vector<2x8xf32>, vector<2x8xf32>, vector<2x8xf32>, vector<2x8xf32>, vector<2x8xf32>, vector<2x8xf32> -> vector<2x128xf32>
    %267 = tpu.concatenate %265, %265, %265, %265, %265, %265, %265, %265, %265, %265, %265, %265, %265, %265, %265, %265 in 1 : vector<2x8xf32>, vector<2x8xf32>, vector<2x8xf32>, vector<2x8xf32>, vector<2x8xf32>, vector<2x8xf32>, vector<2x8xf32>, vector<2x8xf32>, vector<2x8xf32>, vector<2x8xf32>, vector<2x8xf32>, vector<2x8xf32>, vector<2x8xf32>, vector<2x8xf32>, vector<2x8xf32>, vector<2x8xf32> -> vector<2x128xf32>
    %268 = vector.broadcast %157 : vector<1x128xf32> to vector<2x128xf32>
    %269 = arith.mulf %267, %268 : vector<2x128xf32>
    %270 = arith.mulf %266, %269 : vector<2x128xf32>
    %271 = vector.broadcast %158 : vector<1x128xf32> to vector<2x128xf32>
    %272 = arith.subf %271, %270 : vector<2x128xf32>
    %273 = vector.shape_cast %177 : vector<32x128xf32> to vector<2x16x128xf32>
    %274 = vector.shape_cast %269 : vector<2x128xf32> to vector<2x1x128xf32>
    %275 = vector.broadcast %274 : vector<2x1x128xf32> to vector<2x16x128xf32>
    %276 = arith.mulf %273, %275 : vector<2x16x128xf32>
    %277 = vector.shape_cast %272 : vector<2x128xf32> to vector<2x1x128xf32>
    %278 = vector.broadcast %277 : vector<2x1x128xf32> to vector<2x16x128xf32>
    %279 = arith.addf %276, %278 : vector<2x16x128xf32>
    %280 = arith.negf %279 : vector<2x16x128xf32>
    %281 = math.exp %280 : vector<2x16x128xf32>
    %cst_88 = arith.constant 1.000000e+00 : f32
    %282 = vector.broadcast %cst_88 : f32 to vector<2x16x128xf32>
    %283 = arith.addf %282, %281 : vector<2x16x128xf32>
    %284 = arith.divf %282, %283 : vector<2x16x128xf32>
    %285 = arith.mulf %279, %284 : vector<2x16x128xf32>
    %286 = arith.addf %285, %4 : vector<2x16x128xf32>
    %c0_89 = arith.constant 0 : index
    %c0_90 = arith.constant 0 : index
    %c0_91 = arith.constant 0 : index
    %287 = vector.load %arg7[%c0_89, %c0_90, %c0_91] : memref<2x16x128xf32, #tpu.memory_space<vmem>>, vector<2x16x128xf32>
    tpu.vector_store %arg7[%c0_89, %c0_90, %c0_91], %286 {strides = array<i32>} : memref<2x16x128xf32, #tpu.memory_space<vmem>>, vector<2x16x128xf32>,
    return
  }
  func.func @transform_0(%arg0: i32) -> (i32, i32, i32) {
    %c0_i32 = arith.constant 0 : i32
    %c0_i32_0 = arith.constant 0 : i32
    %c0_i32_1 = arith.constant 0 : i32
    return %arg0, %c0_i32, %c0_i32_0 : i32, i32, i32
  }
  func.func @transform_1(%arg0: i32) -> (i32, i32, i32) {
    %c0_i32 = arith.constant 0 : i32
    %c0_i32_0 = arith.constant 0 : i32
    %c0_i32_1 = arith.constant 0 : i32
    return %arg0, %c0_i32, %c0_i32_0 : i32, i32, i32
  }
  func.func @transform_2(%arg0: i32) -> (i32, i32, i32) {
    %c0_i32 = arith.constant 0 : i32
    %c0_i32_0 = arith.constant 0 : i32
    %c0_i32_1 = arith.constant 0 : i32
    %c0_i32_2 = arith.constant 0 : i32
    return %c0_i32, %c0_i32_0, %c0_i32_1 : i32, i32, i32
  }
  func.func @transform_3(%arg0: i32) -> (i32, i32, i32) {
    %c0_i32 = arith.constant 0 : i32
    %c0_i32_0 = arith.constant 0 : i32
    %c0_i32_1 = arith.constant 0 : i32
    %c0_i32_2 = arith.constant 0 : i32
    return %c0_i32, %c0_i32_0, %c0_i32_1 : i32, i32, i32
  }
  func.func @transform_4(%arg0: i32) -> (i32, i32) {
    %c0_i32 = arith.constant 0 : i32
    %c0_i32_0 = arith.constant 0 : i32
    %c0_i32_1 = arith.constant 0 : i32
    return %c0_i32, %c0_i32_0 : i32, i32
  }
  func.func @transform_5(%arg0: i32) -> (i32, i32) {
    %c0_i32 = arith.constant 0 : i32
    %c0_i32_0 = arith.constant 0 : i32
    %c0_i32_1 = arith.constant 0 : i32
    return %c0_i32, %c0_i32_0 : i32, i32
  }
  func.func @transform_6(%arg0: i32) -> (i32, i32, i32) {
    %c0_i32 = arith.constant 0 : i32
    %c0_i32_0 = arith.constant 0 : i32
    %c0_i32_1 = arith.constant 0 : i32
    return %arg0, %c0_i32, %c0_i32_0 : i32, i32, i32
  }
}

</mosaic_0001>

<bundles_post_ra>
// kernel: tpu_custom_call.1
= control target key start
LH: loop header
LB: loop body
LE: loop exit
PB: predicated region body
PF: predicated region fallthrough
CT: control target
= control target key end

     0   :  { %11 = vsyncpa [#allocation4], 0  ;;  %s3367_s0 = inlined_call_operand.hbm [shape: f32[2,16,128], index: 0, kind: input, shape index: {}]   ;;  %s3368_s1 = inlined_call_operand.vmem [shape: f32[2,1,48], index: 1, kind: input, shape index: {}]   ;;  %s3369_s2 = inlined_call_operand.hbm [shape: bf16[3,128,128], index: 2, kind: input, shape index: {}]   ;;  %s3370_s3 = inlined_call_operand.hbm [shape: bf16[3,128,128], index: 3, kind: input, shape index: {}]   ;;  %s3371_s4 = inlined_call_operand.hbm [shape: bf16[48,128], index: 4, kind: input, shape index: {}]   ;;  %s3372_s5 = inlined_call_operand.vmem [shape: f32[8,128], index: 5, kind: input, shape index: {}]   ;;  %s3373_s6 = inlined_call_operand.hbm [shape: f32[2,16,128], index: 6, kind: output, shape index: {}]  }
   0x1   :  { %12 = vsyncpa [#allocation7], 0 }
   0x2   :  { %13 = vsyncpa [#allocation10], 0 }
   0x3   :  { %14 = vsyncpa [#allocation5], 0  ;;  %s2691_s21 = smov [#allocation6]   ;;  %s2573_s25 = scalar_lea.hbm %s3369_s2, 3072 }
   0x4   :  { %s34_s22 = sshll.u32 %s2691_s21, 4  ;;  %p2574_p0 = scmp.ne.s32.totalorder %s3369_s2, %s2573_s25  ;;  %s35_s22 = int_to_ptr.vmem [resolvable:$true] %s34_s22 }
   0x5   :  { %p2577_p1 = scmp.lt.u32.totalorder %s2573_s25, %s3369_s2 }
   0x7   :  { %p2579_p2 = pnand %p2577_p1, %p2574_p0 }
   0x9   :  { %2582 = shalt.err (!%p2579_p2)
}
   0xa   :  { %s2583_s30 = scalar_lea.vmem %s35_s22, 3072  ;;  %p2588_p4 = scmp.lt.s32.totalorder %s35_s22, %s35_s22 }
   0xb   :  { %p2584_p3 = scmp.ne.s32.totalorder %s35_s22, %s2583_s30  ;;  %p2589_p5 = scmp.lt.s32.totalorder %s2583_s30, %s2583_s30 }
   0xd   :  { %p2590_p6 = por %p2589_p5, %p2588_p4 }
   0xf   :  { %p2591_p7 = pnand %p2590_p6, %p2584_p3 }
  0x11   :  { %2594 = shalt.err (!%p2591_p7)
}
  0x12   :  { %s2692_s7 = smov 64   ;;  %s2693_s8 = smov 4  }
  0x13   :  { %40 = dma.hbm_to_vmem [thread:$0]  %s3369_s2, 3072, %s35_s22, [#allocation7], %s2692_s7, %s2692_s7, %s2693_s8  }
  0x14   :  { %s2694_s11 = smov [#allocation3]   ;;  %s2595_s15 = scalar_lea.hbm %s3367_s0, 512 }
  0x15   :  { %s20_s12 = sshll.u32 %s2694_s11, 4  ;;  %p2596_p8 = scmp.ne.s32.totalorder %s3367_s0, %s2595_s15  ;;  %s21_s12 = int_to_ptr.vmem [resolvable:$true] %s20_s12 }
  0x16   :  { %p2599_p9 = scmp.lt.u32.totalorder %s2595_s15, %s3367_s0 }
  0x18   :  { %p2601_p10 = pnand %p2599_p9, %p2596_p8 }
  0x1a   :  { %2604 = shalt.err (!%p2601_p10)
}
  0x1b   :  { %s2605_s20 = scalar_lea.vmem %s21_s12, 512  ;;  %p2610_p12 = scmp.lt.s32.totalorder %s21_s12, %s21_s12 }
  0x1c   :  { %p2606_p11 = scmp.ne.s32.totalorder %s21_s12, %s2605_s20  ;;  %p2611_p13 = scmp.lt.s32.totalorder %s2605_s20, %s2605_s20 }
  0x1e   :  { %p2612_p0 = por %p2611_p13, %p2610_p12 }
  0x20   :  { %p2613_p1 = pnand %p2612_p0, %p2606_p11 }
  0x22   :  { %2616 = shalt.err (!%p2613_p1)
}
  0x23   :  { %s2695_s2 = smov 128   ;;  %s2696_s21 = smov 8  }
  0x24   :  { %26 = dma.hbm_to_vmem [thread:$0]  %s3367_s0, 512, %s21_s12, [#allocation4], %s2695_s2, %s2695_s2, %s2696_s21  }
  0x25   :  { %s2697_s24 = smov [#allocation8]   ;;  %s2698_s26 = smov [#allocation9]  }
  0x26   :  { %s46_s25 = sshll.u32 %s2697_s24, 4  ;;  %s58_s27 = sshll.u32 %s2698_s26, 4  ;;  %s47_s25 = int_to_ptr.vmem [resolvable:$true] %s46_s25  ;;  %s2781_s27 = int_to_ptr.vmem [resolvable:$true] %s58_s27 }
  0x27   :  { %s2617_s30 = scalar_lea.hbm %s3370_s3, 3072 }
  0x28   :  { %p2618_p2 = scmp.ne.s32.totalorder %s3370_s3, %s2617_s30  ;;  %p2621_p3 = scmp.lt.u32.totalorder %s2617_s30, %s3370_s3 }
  0x2a   :  { %p2623_p4 = pnand %p2621_p3, %p2618_p2 }
  0x2c   :  { %2626 = shalt.err (!%p2623_p4)
}
  0x2d   :  { %s2627_s0 = scalar_lea.vmem %s47_s25, 3072  ;;  %p2632_p6 = scmp.lt.s32.totalorder %s47_s25, %s47_s25 }
  0x2e   :  { %p2628_p5 = scmp.ne.s32.totalorder %s47_s25, %s2627_s0  ;;  %p2633_p7 = scmp.lt.s32.totalorder %s2627_s0, %s2627_s0 }
  0x30   :  { %p2634_p8 = por %p2633_p7, %p2632_p6 }
  0x32   :  { %p2635_p9 = pnand %p2634_p8, %p2628_p5 }
  0x34   :  { %2638 = shalt.err (!%p2635_p9)
}
  0x35   :  { %52 = dma.hbm_to_vmem [thread:$0]  %s3370_s3, 3072, %s47_s25, [#allocation7], %s2692_s7, %s2692_s7, %s2693_s8  }
  0x36   :  { %s2639_s17 = scalar_lea.hbm %s3371_s4, 384 }
  0x37   :  { %p2640_p10 = scmp.ne.s32.totalorder %s3371_s4, %s2639_s17  ;;  %p2643_p11 = scmp.lt.u32.totalorder %s2639_s17, %s3371_s4 }
  0x39   :  { %p2645_p12 = pnand %p2643_p11, %p2640_p10 }
  0x3b   :  { %2648 = shalt.err (!%p2645_p12)
}
  0x3c   :  { %s2649_s23 = scalar_lea.vmem %s2781_s27, 384  ;;  %p2654_p0 = scmp.lt.s32.totalorder %s2781_s27, %s2781_s27 }
  0x3d   :  { %p2650_p13 = scmp.ne.s32.totalorder %s2781_s27, %s2649_s23  ;;  %p2655_p1 = scmp.lt.s32.totalorder %s2649_s23, %s2649_s23 }
  0x3f   :  { %p2656_p2 = por %p2655_p1, %p2654_p0 }
  0x41   :  { %p2657_p3 = pnand %p2656_p2, %p2650_p13 }
  0x43   :  { %2660 = shalt.err (!%p2657_p3)
}
  0x44   :  { %64 = dma.hbm_to_vmem [thread:$0]  %s3371_s4, 384, %s2781_s27, [#allocation10], %s2692_s7, %s2692_s7, %s2693_s8  }
  0x45   :  { %2683 = dma.done.wait [#allocation4], 512  }
  0x46   :  { %2684 = vsyncadd [#allocation4], 4294966784 }
  0x47   :  { %2685 = dma.done.wait [#allocation7], 6144  }
  0x48   :  { %2686 = vsyncadd [#allocation7], 4294961152 }
  0x49   :  { %2687 = dma.done.wait [#allocation10], 384  }
  0x4a   :  { %2688 = vsyncadd [#allocation10], 4294966912  ;;  %v2470_v0 = vld [vmem:[#allocation6 + $0x40] sm:$0xff]   ;;  %v2471_v1 = vld [vmem:[#allocation6 + $0x48] sm:$0xff]   ;;  %vm80_vm0 = vcmask 1040384   ;;  %vm155_vm6 = vcmask 1043456  }
  0x4b   :  { %2299 = vmatprep.subr.bf16.mxu0 %v2470_v0  ;;  %vm81_vm1 = vsmask.f32 256  ;;  %vm89_vm2 = vsmask.f32 7938  ;;  %v2472_v2 = vld [vmem:[#allocation6 + $0x50] sm:$0xff]   ;;  %v2473_v5 = vld [vmem:[#allocation6 + $0x58] sm:$0xff]  }
  0x4c   :  { %2300 = vmatpush3.bf16.msra.mxu0 %v2470_v0  ;;  %vm2820_vm3 = vmand %vm80_vm0, %vm81_vm1  ;;  %vm113_vm5 = vsmask.f32 4368  ;;  %v83_v6 = vld [vmem:[#allocation2] sm:$0x1]  ;;  %v91_v7 = vld [vmem:[#allocation2 + $0x8] sm:$0x1] }
  0x4d   :  { %2301 = vmatprep.subr.bf16.mxu0 %v2471_v1  ;;  %vm2826_vm4 = vmand %vm80_vm0, %vm89_vm2  ;;  %v97_v8 = vld [vmem:[#allocation3] sm:$0xff]  ;;  %v84_v9 = vsel %vm2820_vm3, 0, %v83_v6  ;;  %v98_v11 = vld [vmem:[#allocation3 + $0x8] sm:$0xff]  ;;  %vm196_vm9 = vsmask.f32 3328  ;;  %vm484_vm12 = vcmask 1042432  }
  0x4e   :  { %v92_v10 = vsel %vm2826_vm4, 0, %v91_v7  ;;  %v2227_v12 = vpack.c.bf16 %v97_v8, %v97_v8  ;;  %v2474_v13 = vld [vmem:[#allocation6 + $0x60] sm:$0xff]   ;;  %85 = vst [vmem:[#allocation2] sm:$0x1] %v84_v9  ;;  %v2228_v14 = vpack.c.bf16 %v98_v11, %v98_v11  ;;  %v86_v15 = vld [vmem:[#allocation2 + $0xc] sm:$0x1]  ;;  %vm2840_vm7 = vmor %vm81_vm1, %vm113_vm5 }
  0x4f   :  { %93 = vst [vmem:[#allocation2 + $0x8] sm:$0x1] %v92_v10  ;;  %v94_v16 = vld [vmem:[#allocation2 + $0x14] sm:$0x1]  ;;  %v87_v19 = vsel %vm2820_vm3, 0, %v86_v15  ;;  %v99_v21 = vld [vmem:[#allocation3 + $0x10] sm:$0xff]  ;;  %vm2846_vm8 = vmand %vm155_vm6, %vm89_vm2 }
  0x50   :  { %2302 = vmatpush3.bf16.msra.mxu0 %v2471_v1  ;;  %v116_v17 = vshrl.u32 %v2227_v12, 16  ;;  %v119_v18 = vshll.u32 %v2227_v12, 16  ;;  %v95_v20 = vsel %vm2826_vm4, 0, %v94_v16  ;;  %v100_v22 = vld [vmem:[#allocation3 + $0x18] sm:$0xff]  ;;  %v124_v23 = vshrl.u32 %v2228_v14, 16  ;;  %v2475_v37 = vld [vmem:[#allocation6 + $0x68] sm:$0xff]  }
  0x51   :  { %2303 = vmatprep.subr.bf16.mxu0 %v2472_v2  ;;  %v127_v24 = vshll.u32 %v2228_v14, 16  ;;  %88 = vst [vmem:[#allocation2 + $0xc] sm:$0x1] %v87_v19  ;;  %96 = vst [vmem:[#allocation2 + $0x14] sm:$0x1] %v95_v20  ;;  %v2229_v25 = vpack.c.bf16 %v99_v21, %v99_v21  ;;  %v2230_v26 = vpack.c.bf16 %v100_v22, %v100_v22  ;;  %v2476_v53 = vld [vmem:[#allocation6 + $0x70] sm:$0xff]  }
  0x52   :  { %v118_v27 = vrot.slane %v116_v17, 7  ;;  %v126_v29 = vrot.slane %v124_v23, 7  ;;  %v2477_v57 = vld [vmem:[#allocation6 + $0x78] sm:$0xff]   ;;  %vm197_vm10 = vsmask.f32 7440  ;;  %vm485_vm13 = vcmask 1046532  }
  0x53   :  { %v133_v30 = vshrl.u32 %v2229_v25, 16  ;;  %v136_v31 = vshll.u32 %v2229_v25, 16  ;;  %v141_v32 = vshrl.u32 %v2230_v26, 16  ;;  %v144_v36 = vshll.u32 %v2230_v26, 16  ;;  %vm2882_vm11 = vmor %vm196_vm9, %vm197_vm10  ;;  %s2699_s25 = smov 104   ;;  %s2700_s26 = smov 120  }
  0x54   :  { %2304 = vmatpush3.bf16.msra.mxu0 %v2472_v2  ;;  %v121_v33 = vor.u32 %v119_v18, %v118_v27  ;;  %v122_v34 = vrot.slane %v118_v27, 4  ;;  %v129_v38 = vor.u32 %v127_v24, %v126_v29  ;;  %v131_v39 = vrot.slane %v126_v29, 4  ;;  %v2478_v2 = vld [vmem:[#allocation6] sm:$0xff]   ;;  %vm2897_vm14 = vmor %vm484_vm12, %vm485_vm13  ;;  %s2701_s27 = smov 96   ;;  %s2702_s28 = smov 112   ;;  %v2510_v19 = vld [vmem:[#allocation8 + $0x10] sm:$0xff]  }
  0x55   :  { %2305 = vmatprep.subr.bf16.mxu0 %v2473_v5  ;;  %v135_v40 = vrot.slane %v133_v30, 7  ;;  %v143_v41 = vrot.slane %v141_v32, 7  ;;  %v157_v42 = vld [vmem:[#allocation2] sm:$0xf]  ;;  %s2703_s29 = smov 88   ;;  %s2704_s30 = smov 80  }
  0x56   :  { %v161_v43 = vld [vmem:[#allocation2 + $0x8] sm:$0x1]  ;;  %v130_v44 = vsel %vm2840_vm7, %v122_v34, %v129_v38  ;;  %v158_v45 = vsel %vm2846_vm8, %v121_v33, %v157_v42  ;;  %v2479_v38 = vld [vmem:[#allocation6 + $0x8] sm:$0xff]   ;;  %v2481_v42 = vld [vmem:[#allocation6 + $0x18] sm:$0xff]   ;;  %s2705_s9 = smov 72   ;;  %s2706_s12 = smov 56  }
  0x57   :  { %v162_v46 = vsel %vm2820_vm3, %v131_v39, %v161_v43  ;;  %v138_v47 = vor.u32 %v136_v31, %v135_v40  ;;  %159 = vst [vmem:[#allocation2] sm:$0xf] %v158_v45  ;;  %160 = vst [vmem:[#allocation2 + $0x4] sm:$0xf] %v130_v44  ;;  %v139_v48 = vrot.slane %v135_v40, 4  ;;  %v146_v49 = vor.u32 %v144_v36, %v143_v41  ;;  %v2482_v43 = vld [vmem:[#allocation6 + $0x20] sm:$0xff]  }
  0x58   :  { %2306 = vmatpush3.bf16.msra.mxu0 %v2473_v5  ;;  %163 = vst [vmem:[#allocation2 + $0x8] sm:$0x1] %v162_v46  ;;  %v148_v50 = vrot.slane %v143_v41, 4  ;;  %v164_v51 = vld [vmem:[#allocation2 + $0xc] sm:$0xf]  ;;  %v2483_v44 = vld [vmem:[#allocation6 + $0x28] sm:$0xff]  }
  0x59   :  { %2307 = vmatprep.subr.bf16.mxu0 %v2474_v13  ;;  %v168_v52 = vld [vmem:[#allocation2 + $0x14] sm:$0x1]  ;;  %v165_v54 = vsel %vm2846_vm8, %v138_v47, %v164_v51  ;;  %v147_v55 = vsel %vm2840_vm7, %v139_v48, %v146_v49  ;;  %v2480_v41 = vld [vmem:[#allocation6 + $0x10] sm:$0xff]   ;;  %s2708_s14 = smov 40   ;;  %s2709_s15 = smov 32   ;;  %vm1084_vm15 = vcmask 1041409  }
  0x5a   :  { %166 = vst [vmem:[#allocation2 + $0xc] sm:$0xf] %v165_v54  ;;  %v169_v56 = vsel %vm2820_vm3, %v148_v50, %v168_v52  ;;  %167 = vst [vmem:[#allocation2 + $0x10] sm:$0xf] %v147_v55  ;;  %v2484_v45 = vld [vmem:[#allocation6 + $0x30] sm:$0xff]   ;;  %v2485_v48 = vld [vmem:[#allocation6 + $0x38] sm:$0xff]  }
  0x5b   :  { %170 = vst [vmem:[#allocation2 + $0x14] sm:$0x1] %v169_v56  ;;  %s2711_s16 = smov 24   ;;  %s2712_s17 = smov 16   ;;  %vm2713_vm1 = vmmov 0   ;;  %vm856_vm2 = vcmask 392192  }
  0x5c   :  { %2308 = vmatpush3.bf16.msra.mxu0 %v2474_v13  ;;  %vm3374_vm4 = vcmask 64512   ;;  %vm3378_vm5 = vcmask 130048   ;;  %vm3377_vm6 = vcmask 195584   ;;  %vm3375_vm9 = vcmask 261120   ;;  %v2523_v52 = vld [vmem:[#allocation8 + $0xb0] sm:$0xff]  }
  0x5d   :  { %2309 = vmatprep.subr.bf16.mxu0 %v2475_v37  ;;  %vm3376_vm10 = vcmask 326656   ;;  %vm858_vm12 = vcmask 457728   ;;  %vm860_vm13 = vcmask 523264  }
  0x5e   :  { %v174_v58 = vld [vmem:[#allocation2] sm:$0xf]  ;;  %v2862_v59 = vld [vmem:[#allocation2 + $0x4] sm:$0xf] }
  0x5f   :  { %v2864_v60 = vld [vmem:[#allocation2 + $0x8] sm:$0x1]  ;;  %v200_v61 = vshrl.u32 %v174_v58, 16  ;;  %v203_v62 = vshll.u32 %v174_v58, 16  ;;  %v209_v63 = vshll.u32 %v2862_v59, 16  ;;  %v213_v0 = vshrl.u32 %v2862_v59, 16 }
  0x60   :  { %2310 = vmatpush3.bf16.msra.mxu0 %v2475_v37  ;;  %v219_v1 = vshll.u32 %v2864_v60, 16  ;;  %v2148_v39 = vcombine.low %v174_v58, %v2862_v59  ;;  %v489_v46 = vrot.slane %v2862_v59, 5  ;;  %v478_v47 = vld [vmem:[#allocation2] sm:$0xe]  ;;  %v492_v51 = vrot.slane %v2864_v60, 5  ;;  %v2490_v59 = vld [vmem:[#allocation6 + $0x90] sm:$0xff]  }
  0x61   :  { %2311 = vmatprep.subr.bf16.mxu0 %v2476_v53  ;;  %v2869_v4 = vld [vmem:[#allocation2 + $0xc] sm:$0xf]  ;;  %v202_v5 = vrot.slane %v200_v61, 4  ;;  %v205_v6 = vrot.slane %v203_v62, 5  ;;  %v211_v7 = vrot.slane %v209_v63, 5  ;;  %v215_v8 = vrot.slane %v213_v0, 4 }
  0x62   :  { %v2871_v9 = vld [vmem:[#allocation2 + $0x10] sm:$0xf]  ;;  %v221_v10 = vrot.slane %v219_v1, 5  ;;  %v2873_v11 = vld [vmem:[#allocation2 + $0x14] sm:$0x1]  ;;  %v224_v12 = vshrl.u32 %v2869_v4, 16 }
  0x63   :  { %v227_v13 = vshll.u32 %v2869_v4, 16  ;;  %v233_v14 = vshll.u32 %v2871_v9, 16  ;;  %v206_v15 = vor.u32 %v205_v6, %v202_v5  ;;  %v216_v16 = vor.u32 %v215_v8, %v211_v7  ;;  %v2489_v58 = vld [vmem:[#allocation6 + $0x88] sm:$0xff]   ;;  %v2491_v60 = vld [vmem:[#allocation6 + $0x98] sm:$0xff]   ;;  %v2492_v61 = vld [vmem:[#allocation6 + $0xa0] sm:$0xff]  }
  0x64   :  { %2312 = vmatpush3.bf16.msra.mxu0 %v2476_v53  ;;  %v237_v17 = vshrl.u32 %v2871_v9, 16  ;;  %v243_v18 = vshll.u32 %v2873_v11, 16  ;;  %v226_v20 = vrot.slane %v224_v12, 4  ;;  %v2158_v49 = vrot.slane %v478_v47, 9  ;;  %v2487_v53 = vld [vmem:[#allocation6 + $0x80] sm:$0xff]   ;;  %v2493_v62 = vld [vmem:[#allocation6 + $0xa8] sm:$0xff]  }
  0x65   :  { %2313 = vmatprep.subr.bf16.mxu0 %v2477_v57  ;;  %v229_v21 = vrot.slane %v227_v13, 5  ;;  %v235_v22 = vrot.slane %v233_v14, 5  ;;  %v207_v23 = vrot.slane %v206_v15, 4  ;;  %v217_v24 = vrot.slane %v216_v16, 4  ;;  %v2494_v0 = vld [vmem:[#allocation6 + $0xb0] sm:$0xff]   ;;  %v2495_v6 = vld [vmem:[#allocation6 + $0xb8] sm:$0xff]  }
  0x66   :  { %v239_v25 = vrot.slane %v237_v17, 4  ;;  %v245_v31 = vrot.slane %v243_v18, 5  ;;  %v491_v50 = vrot.slane %v489_v46, 4  ;;  %v490_v54 = vsel %vm2897_vm14, %v2158_v49, %v489_v46  ;;  %v479_v1 = vld [vmem:[#allocation2 + $0xc] sm:$0xe] }
  0x67   :  { %v230_v26 = vor.u32 %v229_v21, %v226_v20  ;;  %v212_v27 = vsel %vm2882_vm11, %v207_v23, %v211_v7  ;;  %v222_v29 = vsel %vm2882_vm11, %v217_v24, %v221_v10  ;;  %v2149_v56 = vcombine.low %v2869_v4, %v2871_v9 }
  0x68   :  { %2314 = vmatpush3.bf16.msra.mxu0 %v2477_v57  ;;  %v240_v30 = vor.u32 %v239_v25, %v235_v22  ;;  %v2138_v32 = vcombine.low %v212_v27, %v222_v29  ;;  %v493_v55 = vsel %vm2897_vm14, %v491_v50, %v492_v51  ;;  %v496_v63 = vrot.slane %v2871_v9, 5  ;;  %v2170_v9 = vld [vmem:[%s3372_s5] ss:$0 sm:$0xff] }
  0x69   :  { %2319 = vmatprep.subr.bf16.mxu0 %v2478_v2  ;;  %v231_v33 = vrot.slane %v230_v26, 4  ;;  %v2160_v57 = vcombine.low %v490_v54, %v493_v55  ;;  %v499_v5 = vrot.slane %v2873_v11, 5 }
  0x6a   :  { %v241_v34 = vrot.slane %v240_v30, 4  ;;  %2315 = vmatprep.mubr.bf16.mxu0 %v2138_v32  ;;  %v498_v4 = vrot.slane %v496_v63, 4 }
  0x6b   :  { %v236_v36 = vsel %vm2882_vm11, %v231_v33, %v235_v22 }
  0x6c   :  { %v246_v37 = vsel %vm2882_vm11, %v241_v34, %v245_v31  ;;  %v500_v8 = vsel %vm2897_vm14, %v498_v4, %v499_v5  ;;  %v2710_v4 = vmov 0.0  }
  0x6d   :  { %v2139_v40 = vcombine.low %v236_v36, %v246_v37  ;;  %2359 = vmatprep.subr.bf16.mxu1 %v2710_v4  ;;  %2365 = vmatprep.mubr.msk.bf16.mxu1 %vm2713_vm1, %v2710_v4  ;;  %vm864_vm1 = vcmask 654336  }
  0x6f   :  { %2316 = vmatmul.mubr.bf16.vlgmr.msra.gmra.mrb[0].mxu0 %v2139_v40 }
  0x70   :  { %2320 = vmatpush3.bf16.msra.mxu0 %v2478_v2  ;;  %2335 = vmatprep.mubr.bf16.mxu0 %v2148_v39  ;;  %v2159_v2 = vrot.slane %v479_v1, 9  ;;  %v2496_v1 = vld [vmem:[#allocation9] sm:$0xff]  }
  0x71   :  { %2321 = vmatprep.subr.bf16.mxu0 %v2479_v38  ;;  %2360 = vmatpush3.bf16.msra.mxu1 %v2496_v1 }
  0x72   :  { %v497_v7 = vsel %vm2897_vm14, %v2159_v2, %v496_v63  ;;  %2361 = vmatprep.subr.bf16.mxu1 %v2710_v4 }
  0x73   :  { %v2161_v10 = vcombine.low %v497_v7, %v500_v8  ;;  %v2497_v7 = vld [vmem:[#allocation9 + $0x8] sm:$0xff]  }
  0x74   :  { %2322 = vmatpush3.bf16.msra.mxu0 %v2479_v38 }
  0x75   :  { %2323 = vmatprep.subr.bf16.mxu0 %v2480_v41  ;;  %2362 = vmatpush3.bf16.msra.mxu1 %v2497_v7 }
  0x76   :  { %2363 = vmatprep.subr.bf16.mxu1 %v2710_v4 }
  0x78   :  { %2324 = vmatpush3.bf16.msra.mxu0 %v2480_v41 }
  0x79   :  { %2325 = vmatprep.subr.bf16.mxu0 %v2481_v42 }
  0x7c   :  { %2326 = vmatpush3.bf16.msra.mxu0 %v2481_v42 }
  0x7d   :  { %2327 = vmatprep.subr.bf16.mxu0 %v2482_v43 }
  0x80   :  { %2328 = vmatpush3.bf16.msra.mxu0 %v2482_v43 }
  0x81   :  { %2329 = vmatprep.subr.bf16.mxu0 %v2483_v44 }
  0x84   :  { %2330 = vmatpush3.bf16.msra.mxu0 %v2483_v44 }
  0x85   :  { %2331 = vmatprep.subr.bf16.mxu0 %v2484_v45 }
  0x88   :  { %2332 = vmatpush3.bf16.msra.mxu0 %v2484_v45 }
  0x89   :  { %2333 = vmatprep.subr.bf16.mxu0 %v2485_v48 }
  0x8c   :  { %2334 = vmatpush3.bf16.msra.mxu0 %v2485_v48 }
  0x8d   :  { %2339 = vmatprep.subr.bf16.mxu0 %v2487_v53 }
  0x8f   :  { %2336 = vmatmul.mubr.bf16.vlgmr.msra.gmra.mrb[0].mxu0 %v2149_v56 }
  0x90   :  { %2340 = vmatpush3.bf16.msra.mxu0 %v2487_v53  ;;  %2355 = vmatprep.mubr.bf16.mxu0 %v2160_v57  ;;  %v1051_v57 = vld [vmem:[%s3368_s1 + $0x1] sm:$0x1] }
  0x91   :  { %2341 = vmatprep.subr.bf16.mxu0 %v2489_v58 }
  0x94   :  { %2342 = vmatpush3.bf16.msra.mxu0 %v2489_v58  ;;  %v2178_v58 = vmul.f32 -1.442695, %v1051_v57 }
  0x95   :  { %2343 = vmatprep.subr.bf16.mxu0 %v2490_v59 }
  0x96   :  { %2525 = vpow2.f32 %v2178_v58 }
  0x98   :  { %2344 = vmatpush3.bf16.msra.mxu0 %v2490_v59  ;;  %v1050_v59 = vld [vmem:[%s3368_s1] sm:$0x1]  ;;  %s2707_s1 = smov 48  }
  0x99   :  { %2345 = vmatprep.subr.bf16.mxu0 %v2491_v60 }
  0x9c   :  { %2346 = vmatpush3.bf16.msra.mxu0 %v2491_v60  ;;  %v2177_v60 = vmul.f32 -1.442695, %v1050_v59 }
  0x9d   :  { %2347 = vmatprep.subr.bf16.mxu0 %v2492_v61 }
  0x9e   :  { %2527 = vpow2.f32 %v2177_v60 }
  0xa0   :  { %2348 = vmatpush3.bf16.msra.mxu0 %v2492_v61  ;;  %v2526_v61 = vpop.eup %2525 }
  0xa1   :  { %2349 = vmatprep.subr.bf16.mxu0 %v2493_v62 }
  0xa4   :  { %2350 = vmatpush3.bf16.msra.mxu0 %v2493_v62  ;;  %v1059_v62 = vadd.f32 1.0, %v2526_v61 }
  0xa5   :  { %2351 = vmatprep.subr.bf16.mxu0 %v2494_v0 }
  0xa6   :  { %2529 = vrcp.f32 %v1059_v62 }
  0xa8   :  { %2352 = vmatpush3.bf16.msra.mxu0 %v2494_v0  ;;  %v2528_v63 = vpop.eup %2527 }
  0xa9   :  { %2353 = vmatprep.subr.bf16.mxu0 %v2495_v6  ;;  %v1058_v0 = vadd.f32 1.0, %v2528_v63 }
  0xab   :  { %2531 = vrcp.f32 %v1058_v0 }
  0xac   :  { %2354 = vmatpush3.bf16.msra.mxu0 %v2495_v6 }
  0xaf   :  { %2356 = vmatmul.mubr.bf16.vlgmr.msra.gmra.mrb[0].mxu0 %v2161_v10 }
  0xb0   :  { %v2530_v2 = vpop.eup %2529 }
  0xb1   :  { %v1065_v5 = vmul.f32 %v2530_v2, %v1051_v57 }
  0xb3   :  { %v1067_v10 = vpack.c.bf16 %v1065_v5, %v1065_v5 }
  0xb5   :  { %v2532_v6 = vpop.eup %2531 }
  0xb6   :  { %v1064_v8 = vmul.f32 %v2532_v6, %v1050_v59 }
 0x182   :  { %v2357_v12 = vpop.f32.mrb[0].mxu0 }
 0x183   :  { %v2916_v13 = vadd.f32 %v2357_v12, %v2170_v9  ;;  %v608_v11 = vpop.f32.mrb[1].mxu0  ;;  %v1082_v12 = vunpack.c.l.b16 %v1067_v10 }
 0x184   :  { %v2918_v14 = vadd.f32 %v2170_v9, %v608_v11  ;;  %v2358_v15 = vpop.f32.mrb[2].mxu0  ;;  %v2498_v11 = vld [vmem:[#allocation9 + $0x10] sm:$0xff]  }
 0x185   :  { %v2920_v16 = vadd.f32 %v2358_v15, %v2170_v9  ;;  %v611_v17 = vpop.f32.mrb[3].mxu0  ;;  %v714_v20 = vmul.f32 %v2916_v13, %v2916_v13  ;;  %2364 = vmatpush3.bf16.msra.mxu1 %v2498_v11 }
 0x186   :  { %v2922_v18 = vadd.f32 %v2170_v9, %v611_v17  ;;  %v712_v23 = vmul.f32 %v2918_v14, %v2918_v14  ;;  %v1066_v9 = vpack.c.bf16 %v1064_v8, %v1064_v8  ;;  %v1083_v17 = vrot.slane %v1082_v12, 7 }
 0x187   :  { %v642_v21 = vadd.f32 %v2920_v16, %v2916_v13  ;;  %v715_v22 = vmul.f32 %v2920_v16, %v2920_v16 }
 0x188   :  { %v635_v24 = vadd.f32 %v2922_v18, %v2918_v14  ;;  %v713_v25 = vmul.f32 %v2922_v18, %v2922_v18  ;;  %v1081_v15 = vunpack.c.l.b16 %v1066_v9 }
 0x189   :  { %v643_v26 = vrot.slane %v642_v21, 4  ;;  %v723_v27 = vadd.f32 %v715_v22, %v714_v20 }
 0x18a   :  { %v636_v29 = vrot.slane %v635_v24, 4  ;;  %v716_v30 = vadd.f32 %v713_v25, %v712_v23  ;;  %v1085_v20 = vsel %vm1084_vm15, %v1083_v17, %v1081_v15  ;;  %vm862_vm15 = vcmask 588800  }
 0x18b   :  { %v644_v31 = vadd.f32 %v643_v26, %v642_v21  ;;  %v724_v32 = vrot.slane %v723_v27, 4  ;;  %v1086_v21 = vpack.c.b16 %v1085_v20, %v1085_v20 }
 0x18c   :  { %v637_v33 = vadd.f32 %v636_v29, %v635_v24  ;;  %v717_v34 = vrot.slane %v716_v30, 4 }
 0x18d   :  { %v645_v36 = vrot.slane %v644_v31, 2  ;;  %v725_v37 = vadd.f32 %v724_v32, %v723_v27  ;;  %2366 = vmatmul.mubr.msk.bf16.vlgmr.msra.gmra.mrb[0].mxu1 %vm856_vm2, %v1086_v21 }
 0x18e   :  { %v638_v38 = vrot.slane %v637_v33, 2  ;;  %v718_v39 = vadd.f32 %v717_v34, %v716_v30 }
 0x18f   :  { %v646_v40 = vadd.f32 %v645_v36, %v644_v31  ;;  %v726_v41 = vrot.slane %v725_v37, 2 }
 0x190   :  { %v639_v42 = vadd.f32 %v638_v38, %v637_v33  ;;  %v719_v43 = vrot.slane %v718_v39, 2 }
 0x191   :  { %v647_v44 = vrot.slane %v646_v40, 1  ;;  %v727_v45 = vadd.f32 %v726_v41, %v725_v37 }
 0x192   :  { %v640_v46 = vrot.slane %v639_v42, 1  ;;  %v720_v47 = vadd.f32 %v719_v43, %v718_v39 }
 0x193   :  { %v648_v48 = vadd.f32 %v647_v44, %v646_v40  ;;  %v728_v50 = vrot.slane %v727_v45, 1 }
 0x194   :  { %v641_v49 = vadd.f32 %v640_v46, %v639_v42  ;;  %v721_v53 = vrot.slane %v720_v47, 1 }
 0x195   :  { %v729_v54 = vadd.f32 %v728_v50, %v727_v45 }
 0x196   :  { %v2937_v51 = vsel %vm80_vm0, %v641_v49, %v648_v48  ;;  %v722_v55 = vadd.f32 %v721_v53, %v720_v47 }
 0x197   :  { %660 = vrot.lane.b32.xlu1 %v2937_v51, %s2699_s25  ;;  %652 = vrot.lane.b32.xlu0 %v2937_v51, %s2700_s26 }
 0x198   :  { %v2948_v56 = vsel %vm80_vm0, %v722_v55, %v729_v54 }
 0x19b   :  { %664 = vrot.lane.b32.xlu1 %v2937_v51, %s2701_s27  ;;  %656 = vrot.lane.b32.xlu0 %v2937_v51, %s2702_s28 }
 0x19f   :  { %668 = vrot.lane.b32.xlu1 %v2937_v51, %s2703_s29  ;;  %736 = vrot.lane.b32.xlu0 %v2948_v56, %s2702_s28 }
 0x1a3   :  { %672 = vrot.lane.b32.xlu1 %v2937_v51, %s2704_s30  ;;  %740 = vrot.lane.b32.xlu0 %v2948_v56, %s2699_s25 }
 0x1a7   :  { %676 = vrot.lane.b32.xlu1 %v2937_v51, %s2705_s9  ;;  %744 = vrot.lane.b32.xlu0 %v2948_v56, %s2701_s27 }
 0x1ab   :  { %680 = vrot.lane.b32.xlu1 %v2937_v51, %s2692_s7  ;;  %748 = vrot.lane.b32.xlu0 %v2948_v56, %s2703_s29 }
 0x1af   :  { %684 = vrot.lane.b32.xlu1 %v2937_v51, %s2706_s12  ;;  %752 = vrot.lane.b32.xlu0 %v2948_v56, %s2704_s30 }
 0x1b3   :  { %732 = vrot.lane.b32.xlu1 %v2948_v56, %s2700_s26  ;;  %756 = vrot.lane.b32.xlu0 %v2948_v56, %s2705_s9 }
 0x1b7   :  { %688 = vrot.lane.b32.xlu1 %v2937_v51, %s2707_s1  ;;  %760 = vrot.lane.b32.xlu0 %v2948_v56, %s2692_s7 }
 0x1bb   :  { %692 = vrot.lane.b32.xlu1 %v2937_v51, %s2708_s14  ;;  %764 = vrot.lane.b32.xlu0 %v2948_v56, %s2706_s12 }
 0x1bf   :  { %696 = vrot.lane.b32.xlu1 %v2937_v51, %s2709_s15  ;;  %768 = vrot.lane.b32.xlu0 %v2948_v56, %s2707_s1 }
 0x1c3   :  { %700 = vrot.lane.b32.xlu1 %v2937_v51, %s2711_s16  ;;  %772 = vrot.lane.b32.xlu0 %v2948_v56, %s2708_s14 }
 0x1c7   :  { %704 = vrot.lane.b32.xlu1 %v2937_v51, %s2712_s17  ;;  %776 = vrot.lane.b32.xlu0 %v2948_v56, %s2709_s15 }
 0x1cb   :  { %708 = vrot.lane.b32.xlu1 %v2937_v51, %s2696_s21  ;;  %780 = vrot.lane.b32.xlu0 %v2948_v56, %s2711_s16 }
 0x1cf   :  { %788 = vrot.lane.b32.xlu1 %v2948_v56, %s2696_s21  ;;  %784 = vrot.lane.b32.xlu0 %v2948_v56, %s2712_s17 }
 0x209   :  { %v661_v22 = vpop.permute.xlu1 %660  ;;  %v653_v23 = vpop.permute.xlu0 %652 }
 0x20a   :  { %v655_v33 = vadd.f32 %v653_v23, %v2937_v51 }
 0x20d   :  { %v665_v24 = vpop.permute.xlu1 %664  ;;  %v657_v25 = vpop.permute.xlu0 %656 }
 0x20e   :  { %v659_v34 = vadd.f32 %v657_v25, %v655_v33 }
 0x210   :  { %v663_v38 = vadd.f32 %v661_v22, %v659_v34 }
 0x211   :  { %v669_v26 = vpop.permute.xlu1 %668  ;;  %v737_v27 = vpop.permute.xlu0 %736 }
 0x212   :  { %v667_v41 = vadd.f32 %v665_v24, %v663_v38 }
 0x214   :  { %v671_v45 = vadd.f32 %v669_v26, %v667_v41  ;;  %v2500_v41 = vld [vmem:[#allocation8 + $0x48] sm:$0xff]  }
 0x215   :  { %v673_v29 = vpop.permute.xlu1 %672  ;;  %v741_v30 = vpop.permute.xlu0 %740 }
 0x216   :  { %v675_v50 = vadd.f32 %v673_v29, %v671_v45 }
 0x219   :  { %v677_v31 = vpop.permute.xlu1 %676  ;;  %v745_v32 = vpop.permute.xlu0 %744 }
 0x21a   :  { %v679_v55 = vadd.f32 %v677_v31, %v675_v50 }
 0x21d   :  { %v681_v36 = vpop.permute.xlu1 %680  ;;  %v749_v37 = vpop.permute.xlu0 %748 }
 0x21e   :  { %v683_v58 = vadd.f32 %v681_v36, %v679_v55 }
 0x221   :  { %v685_v39 = vpop.permute.xlu1 %684  ;;  %v753_v40 = vpop.permute.xlu0 %752 }
 0x222   :  { %v687_v62 = vadd.f32 %v685_v39, %v683_v58 }
 0x225   :  { %v733_v42 = vpop.permute.xlu1 %732  ;;  %v757_v43 = vpop.permute.xlu0 %756 }
 0x226   :  { %v735_v44 = vadd.f32 %v733_v42, %v2948_v56  ;;  %v2501_v42 = vld [vmem:[#allocation8 + $0x50] sm:$0xff]  }
 0x228   :  { %v739_v46 = vadd.f32 %v737_v27, %v735_v44  ;;  %v2502_v44 = vld [vmem:[#allocation8 + $0x58] sm:$0xff]  }
 0x229   :  { %v689_v47 = vpop.permute.xlu1 %688  ;;  %v761_v48 = vpop.permute.xlu0 %760 }
 0x22a   :  { %v743_v49 = vadd.f32 %v741_v30, %v739_v46  ;;  %v691_v0 = vadd.f32 %v689_v47, %v687_v62  ;;  %v2503_v46 = vld [vmem:[#allocation8 + $0x60] sm:$0xff]   ;;  %v2504_v47 = vld [vmem:[#allocation8 + $0x68] sm:$0xff]  }
 0x22c   :  { %v747_v53 = vadd.f32 %v745_v32, %v743_v49  ;;  %v2505_v49 = vld [vmem:[#allocation8 + $0x70] sm:$0xff]  }
 0x22d   :  { %v693_v54 = vpop.permute.xlu1 %692  ;;  %v765_v51 = vpop.permute.xlu0 %764 }
 0x22e   :  { %v751_v57 = vadd.f32 %v749_v37, %v747_v53  ;;  %v695_v4 = vadd.f32 %v693_v54, %v691_v0  ;;  %v2506_v53 = vld [vmem:[#allocation8 + $0x78] sm:$0xff]  }
 0x230   :  { %v755_v59 = vadd.f32 %v753_v40, %v751_v57  ;;  %v2499_v40 = vld [vmem:[#allocation8 + $0x40] sm:$0xff]  }
 0x231   :  { %v697_v60 = vpop.permute.xlu1 %696  ;;  %v769_v61 = vpop.permute.xlu0 %768  ;;  %2369 = vmatprep.subr.bf16.mxu1 %v2499_v40  ;;  %v3079_v57 = vld [vmem:[#allocation8] sm:$0xff]  }
 0x232   :  { %v759_v63 = vadd.f32 %v757_v43, %v755_v59  ;;  %v699_v6 = vadd.f32 %v697_v60, %v695_v4  ;;  %2370 = vmatpush3.bf16.msra.mxu1 %v2499_v40 }
 0x233   :  { %2371 = vmatprep.subr.bf16.mxu1 %v2500_v41 }
 0x234   :  { %v763_v1 = vadd.f32 %v761_v48, %v759_v63 }
 0x235   :  { %v701_v56 = vpop.permute.xlu1 %700  ;;  %v773_v2 = vpop.permute.xlu0 %772 }
 0x236   :  { %v767_v5 = vadd.f32 %v765_v51, %v763_v1  ;;  %v703_v9 = vadd.f32 %v701_v56, %v699_v6  ;;  %2372 = vmatpush3.bf16.msra.mxu1 %v2500_v41 }
 0x237   :  { %2373 = vmatprep.subr.bf16.mxu1 %v2501_v42 }
 0x238   :  { %v771_v7 = vadd.f32 %v769_v61, %v767_v5 }
 0x239   :  { %v705_v8 = vpop.permute.xlu1 %704  ;;  %v777_v10 = vpop.permute.xlu0 %776 }
 0x23a   :  { %v775_v12 = vadd.f32 %v773_v2, %v771_v7  ;;  %v707_v11 = vadd.f32 %v705_v8, %v703_v9  ;;  %2374 = vmatpush3.bf16.msra.mxu1 %v2501_v42 }
 0x23b   :  { %2375 = vmatprep.subr.bf16.mxu1 %v2502_v44 }
 0x23c   :  { %v779_v15 = vadd.f32 %v777_v10, %v775_v12 }
 0x23d   :  { %v709_v17 = vpop.permute.xlu1 %708  ;;  %v781_v20 = vpop.permute.xlu0 %780 }
 0x23e   :  { %v711_v21 = vadd.f32 %v709_v17, %v707_v11  ;;  %v783_v23 = vadd.f32 %v781_v20, %v779_v15  ;;  %2376 = vmatpush3.bf16.msra.mxu1 %v2502_v44 }
 0x23f   :  { %2377 = vmatprep.subr.bf16.mxu1 %v2503_v46 }
 0x240   :  { %v3011_v22 = vmul.f32 0.00390625, %v711_v21 }
 0x241   :  { %v785_v24 = vpop.permute.xlu0 %784  ;;  %v789_v26 = vpop.permute.xlu1 %788 }
 0x242   :  { %v787_v25 = vadd.f32 %v785_v24, %v783_v23  ;;  %801 = vrot.lane.b32.xlu0 %v3011_v22, %s2696_s21  ;;  %v795_v29 = vmul.f32 %v3011_v22, %v3011_v22  ;;  %2378 = vmatpush3.bf16.msra.mxu1 %v2503_v46 }
 0x243   :  { %2379 = vmatprep.subr.bf16.mxu1 %v2504_v47 }
 0x244   :  { %v791_v27 = vadd.f32 %v789_v26, %v787_v25 }
 0x246   :  { %v794_v30 = vmul.f32 0.00390625, %v791_v27  ;;  %804 = vrot.lane.b32.xlu0 %v3011_v22, %s2712_s17  ;;  %2380 = vmatpush3.bf16.msra.mxu1 %v2504_v47  ;;  %v2714_v27 = vmov 1966171168  }
 0x247   :  { %2381 = vmatprep.subr.bf16.mxu1 %v2505_v49 }
 0x248   :  { %v796_v31 = vsub.f32 %v794_v30, %v795_v29  ;;  %v950_v29 = vunpack.c.l.s4 %v2714_v27  ;;  %v952_v30 = vlaneseq }
 0x24a   :  { %v797_v32 = vmax.f32 %v796_v31, 0.0  ;;  %807 = vrot.lane.b32.xlu0 %v3011_v22, %s2711_s16  ;;  %2382 = vmatpush3.bf16.msra.mxu1 %v2505_v49  ;;  %v951_v41 = vunpack.c.0.s8 %v950_v29  ;;  %v953_v42 = vshrl.u32 %v952_v30, 7  ;;  %v2171_v49 = vld [vmem:[%s3372_s5 + $0x1] ss:$0 sm:$0xff] }
 0x24b   :  { %2383 = vmatprep.subr.bf16.mxu1 %v2506_v53 }
 0x24c   :  { %v798_v33 = vadd.f32 1e-05, %v797_v32 }
 0x24e   :  { %2533 = vrsqrt.f32 %v798_v33  ;;  %810 = vrot.lane.b32.xlu0 %v3011_v22, %s2709_s15  ;;  %2384 = vmatpush3.bf16.msra.mxu1 %v2506_v53 }
 0x24f   :  { %2389 = vmatprep.subr.bf16.mxu1 %v3079_v57 }
 0x252   :  { %813 = vrot.lane.b32.xlu0 %v3011_v22, %s2708_s14 }
 0x256   :  { %816 = vrot.lane.b32.xlu0 %v3011_v22, %s2707_s1 }
 0x258   :  { %v3027_v34 = vpop.eup %2533 }
 0x259   :  { %880 = vrot.lane.b32.xlu1 %v3027_v34, %s2712_s17 }
 0x25a   :  { %819 = vrot.lane.b32.xlu0 %v3011_v22, %s2706_s12 }
 0x25d   :  { %883 = vrot.lane.b32.xlu1 %v3027_v34, %s2711_s16 }
 0x25e   :  { %822 = vrot.lane.b32.xlu0 %v3011_v22, %s2692_s7 }
 0x260   :  { %v3077_v36 = vpop.f32.mrb[0].mxu1 }
 0x261   :  { %886 = vrot.lane.b32.xlu1 %v3027_v34, %s2709_s15  ;;  %v2367_v37 = vpop.f32.mrb[1].mxu1 }
 0x262   :  { %825 = vrot.lane.b32.xlu0 %v3011_v22, %s2705_s9  ;;  %v1145_v38 = vpop.f32.mrb[2].mxu1 }
 0x263   :  { %v2368_v39 = vpop.f32.mrb[3].mxu1 }
 0x265   :  { %889 = vrot.lane.b32.xlu1 %v3027_v34, %s2708_s14 }
 0x266   :  { %828 = vrot.lane.b32.xlu0 %v3011_v22, %s2704_s30 }
 0x269   :  { %892 = vrot.lane.b32.xlu1 %v3027_v34, %s2707_s1 }
 0x26a   :  { %877 = vrot.lane.b32.xlu0 %v3027_v34, %s2696_s21 }
 0x26d   :  { %895 = vrot.lane.b32.xlu1 %v3027_v34, %s2706_s12 }
 0x26e   :  { %831 = vrot.lane.b32.xlu0 %v3011_v22, %s2703_s29 }
 0x271   :  { %898 = vrot.lane.b32.xlu1 %v3027_v34, %s2692_s7 }
 0x272   :  { %834 = vrot.lane.b32.xlu0 %v3011_v22, %s2701_s27 }
 0x275   :  { %901 = vrot.lane.b32.xlu1 %v3027_v34, %s2705_s9 }
 0x276   :  { %837 = vrot.lane.b32.xlu0 %v3011_v22, %s2699_s25 }
 0x279   :  { %904 = vrot.lane.b32.xlu1 %v3027_v34, %s2704_s30 }
 0x27a   :  { %840 = vrot.lane.b32.xlu0 %v3011_v22, %s2702_s28 }
 0x27d   :  { %907 = vrot.lane.b32.xlu1 %v3027_v34, %s2703_s29 }
 0x281   :  { %910 = vrot.lane.b32.xlu1 %v3027_v34, %s2701_s27 }
 0x285   :  { %913 = vrot.lane.b32.xlu1 %v3027_v34, %s2699_s25 }
 0x289   :  { %916 = vrot.lane.b32.xlu1 %v3027_v34, %s2702_s28 }
 0x28d   :  { %919 = vrot.lane.b32.xlu1 %v3027_v34, %s2700_s26 }
 0x291   :  { %843 = vrot.lane.b32.xlu1 %v3011_v22, %s2700_s26 }
 0x2b4   :  { %v802_v43 = vpop.permute.xlu0 %801 }
 0x2b5   :  { %v847_v23 = vsel %vm3374_vm4, %v3011_v22, %v802_v43 }
 0x2b8   :  { %v805_v45 = vpop.permute.xlu0 %804 }
 0x2b9   :  { %v849_v25 = vsel %vm3378_vm5, %v847_v23, %v805_v45 }
 0x2bc   :  { %v808_v48 = vpop.permute.xlu0 %807 }
 0x2bd   :  { %v851_v31 = vsel %vm3377_vm6, %v849_v25, %v808_v48 }
 0x2c0   :  { %v811_v50 = vpop.permute.xlu0 %810 }
 0x2c1   :  { %v853_v32 = vsel %vm3375_vm9, %v851_v31, %v811_v50 }
 0x2c4   :  { %v814_v54 = vpop.permute.xlu0 %813 }
 0x2c8   :  { %v817_v51 = vpop.permute.xlu0 %816 }
 0x2cb   :  { %v881_v55 = vpop.permute.xlu1 %880 }
 0x2cc   :  { %v820_v58 = vpop.permute.xlu0 %819 }
 0x2cf   :  { %v884_v59 = vpop.permute.xlu1 %883 }
 0x2d0   :  { %v823_v60 = vpop.permute.xlu0 %822 }
 0x2d3   :  { %v887_v61 = vpop.permute.xlu1 %886 }
 0x2d4   :  { %v826_v62 = vpop.permute.xlu0 %825 }
 0x2d7   :  { %v890_v63 = vpop.permute.xlu1 %889 }
 0x2d8   :  { %v829_v0 = vpop.permute.xlu0 %828 }
 0x2db   :  { %v893_v1 = vpop.permute.xlu1 %892 }
 0x2dc   :  { %v878_v2 = vpop.permute.xlu0 %877 }
 0x2dd   :  { %v922_v5 = vsel %vm3374_vm4, %v3027_v34, %v878_v2  ;;  %v855_v34 = vsel %vm3376_vm10, %v853_v32, %v814_v54  ;;  %vm866_vm4 = vcmask 719872   ;;  %v3111_v54 = vsub.s32 %v951_v41, %v953_v42 }
 0x2de   :  { %v923_v6 = vsel %vm3378_vm5, %v922_v5, %v881_v55  ;;  %v857_v38 = vsel %vm856_vm2, %v855_v34, %v817_v51  ;;  %vm872_vm5 = vcmask 916480  }
 0x2df   :  { %v896_v56 = vpop.permute.xlu1 %895  ;;  %v924_v8 = vsel %vm3377_vm6, %v923_v6, %v884_v59  ;;  %v859_v43 = vsel %vm858_vm12, %v857_v38, %v820_v58  ;;  %vm874_vm6 = vcmask 982016  }
 0x2e0   :  { %v925_v9 = vsel %vm3375_vm9, %v924_v8, %v887_v61  ;;  %v832_v12 = vpop.permute.xlu0 %831  ;;  %vm868_vm9 = vcmask 785408   ;;  %v861_v45 = vsel %vm860_vm13, %v859_v43, %v823_v60 }
 0x2e1   :  { %v926_v15 = vsel %vm3376_vm10, %v925_v9, %v890_v63  ;;  %vm870_vm10 = vcmask 850944   ;;  %v863_v47 = vsel %vm862_vm15, %v861_v45, %v826_v62 }
 0x2e2   :  { %v927_v17 = vsel %vm856_vm2, %v926_v15, %v893_v1  ;;  %v865_v50 = vsel %vm864_vm1, %v863_v47, %v829_v0 }
 0x2e3   :  { %v899_v4 = vpop.permute.xlu1 %898  ;;  %v928_v24 = vsel %vm858_vm12, %v927_v17, %v896_v56  ;;  %v867_v55 = vsel %vm866_vm4, %v865_v50, %v832_v12  ;;  %v2172_v56 = vld [vmem:[%s3372_s5 + $0x2] ss:$0 sm:$0xff] }
 0x2e4   :  { %v835_v21 = vpop.permute.xlu0 %834  ;;  %v929_v33 = vsel %vm860_vm13, %v928_v24, %v899_v4  ;;  %v3123_v4 = vsub.s32 0, %v953_v42 }
 0x2e5   :  { %v869_v60 = vsel %vm868_vm9, %v867_v55, %v835_v21 }
 0x2e7   :  { %v902_v7 = vpop.permute.xlu1 %901 }
 0x2e8   :  { %v930_v22 = vsel %vm862_vm15, %v929_v33, %v902_v7  ;;  %v838_v37 = vpop.permute.xlu0 %837 }
 0x2e9   :  { %v871_v62 = vsel %vm870_vm10, %v869_v60, %v838_v37 }
 0x2eb   :  { %v905_v10 = vpop.permute.xlu1 %904 }
 0x2ec   :  { %v931_v39 = vsel %vm864_vm1, %v930_v22, %v905_v10  ;;  %v841_v58 = vpop.permute.xlu0 %840 }
 0x2ed   :  { %v873_v63 = vsel %vm872_vm5, %v871_v62, %v841_v58 }
 0x2ef   :  { %v908_v11 = vpop.permute.xlu1 %907 }
 0x2f0   :  { %v932_v44 = vsel %vm866_vm4, %v931_v39, %v908_v11 }
 0x2f3   :  { %v911_v20 = vpop.permute.xlu1 %910 }
 0x2f4   :  { %v933_v46 = vsel %vm868_vm9, %v932_v44, %v911_v20 }
 0x2f7   :  { %v914_v26 = vpop.permute.xlu1 %913 }
 0x2f8   :  { %v934_v48 = vsel %vm870_vm10, %v933_v46, %v914_v26 }
 0x2fb   :  { %v917_v40 = vpop.permute.xlu1 %916 }
 0x2fc   :  { %v935_v53 = vsel %vm872_vm5, %v934_v48, %v917_v40 }
 0x2ff   :  { %v920_v51 = vpop.permute.xlu1 %919 }
 0x300   :  { %v936_v59 = vsel %vm874_vm6, %v935_v53, %v920_v51 }
 0x301   :  { %v941_v61 = vmul.f32 %v2171_v49, %v936_v59 }
 0x303   :  { %v955_v1 = vrot.slane %v941_v61, %v3111_v54  ;;  %v844_v0 = vpop.permute.xlu1 %843 }
 0x304   :  { %v875_v2 = vsel %vm874_vm6, %v873_v63, %v844_v0 }
 0x305   :  { %v956_v5 = vcombine.high %v955_v1, %v955_v1  ;;  %v963_v6 = vrot.slane %v955_v1, %v3111_v54  ;;  %v942_v7 = vmul.f32 %v941_v61, %v875_v2 }
 0x307   :  { %v970_v8 = vrot.slane %v956_v5, %v3111_v54  ;;  %v947_v10 = vsub.f32 %v2172_v56, %v942_v7  ;;  %v974_v9 = vrot.slane %v963_v6, %v3123_v4 }
 0x309   :  { %v992_v12 = vrot.slane %v947_v10, %v3111_v54  ;;  %v978_v11 = vrot.slane %v970_v8, %v3123_v4  ;;  %v981_v20 = vmul.f32 %v974_v9, %v2918_v14  ;;  %v982_v21 = vmul.f32 %v974_v9, %v2922_v18 }
 0x30b   :  { %v993_v15 = vcombine.high %v992_v12, %v992_v12  ;;  %v1000_v17 = vrot.slane %v992_v12, %v3111_v54  ;;  %v983_v25 = vmul.f32 %v978_v11, %v2916_v13  ;;  %v984_v26 = vmul.f32 %v978_v11, %v2920_v16  ;;  %v2179_v13 = vld [vmem:[%s3372_s5 + $0x6] ss:$0 sm:$0xff] }
 0x30c   :  { %v1143_v16 = vadd.f32 %v2179_v13, %v3077_v36 }
 0x30d   :  { %v1007_v23 = vrot.slane %v993_v15, %v3111_v54  ;;  %v1011_v24 = vrot.slane %v1000_v17, %v3123_v4  ;;  %v1237_v17 = vld [vmem:[#allocation2] sm:$0xf] }
 0x30e   :  { %v1155_v41 = vrot.slane %v1143_v16, %v3111_v54 }
 0x30f   :  { %v1015_v27 = vrot.slane %v1007_v23, %v3123_v4  ;;  %v1018_v29 = vadd.f32 %v1011_v24, %v981_v20  ;;  %v1019_v30 = vadd.f32 %v1011_v24, %v982_v21 }
 0x310   :  { %v1156_v45 = vcombine.high %v1155_v41, %v1155_v41  ;;  %v1163_v46 = vrot.slane %v1155_v41, %v3111_v54 }
 0x311   :  { %v1020_v31 = vadd.f32 %v1015_v27, %v983_v25  ;;  %v1021_v32 = vadd.f32 %v1015_v27, %v984_v26  ;;  %v2173_v33 = vmul.f32 -1.442695, %v1018_v29  ;;  %v2174_v34 = vmul.f32 -1.442695, %v1019_v30  ;;  %v1241_v25 = vld [vmem:[#allocation2 + $0x8] sm:$0x1] }
 0x312   :  { %v1170_v47 = vrot.slane %v1156_v45, %v3111_v54  ;;  %v1174_v36 = vrot.slane %v1163_v46, %v3123_v4 }
 0x313   :  { %2535 = vpow2.f32 %v2173_v33  ;;  %v2175_v14 = vmul.f32 -1.442695, %v1020_v31  ;;  %v2176_v22 = vmul.f32 -1.442695, %v1021_v32 }
 0x314   :  { %2537 = vpow2.f32 %v2174_v34  ;;  %v1178_v53 = vrot.slane %v1170_v47, %v3123_v4 }
 0x315   :  { %2539 = vpow2.f32 %v2175_v14  ;;  %v1248_v14 = vld [vmem:[#allocation2 + $0x14] sm:$0x1] }
 0x316   :  { %2541 = vpow2.f32 %v2176_v22 }
 0x31d   :  { %v2536_v18 = vpop.eup %2535 }
 0x31e   :  { %v2538_v37 = vpop.eup %2537  ;;  %v1034_v38 = vadd.f32 1.0, %v2536_v18 }
 0x31f   :  { %v2540_v39 = vpop.eup %2539  ;;  %v1035_v40 = vadd.f32 1.0, %v2538_v37 }
 0x320   :  { %v2542_v42 = vpop.eup %2541  ;;  %v1036_v43 = vadd.f32 1.0, %v2540_v39  ;;  %2543 = vrcp.f32 %v1034_v38 }
 0x321   :  { %v1037_v44 = vadd.f32 1.0, %v2542_v42  ;;  %2545 = vrcp.f32 %v1035_v40 }
 0x322   :  { %2547 = vrcp.f32 %v1036_v43 }
 0x323   :  { %2549 = vrcp.f32 %v1037_v44 }
 0x32a   :  { %v2544_v48 = vpop.eup %2543 }
 0x32b   :  { %v2546_v49 = vpop.eup %2545  ;;  %v1046_v50 = vmul.f32 %v2544_v48, %v1018_v29 }
 0x32c   :  { %v2548_v51 = vpop.eup %2547  ;;  %v1047_v55 = vmul.f32 %v2546_v49, %v1019_v30 }
 0x32d   :  { %v2550_v58 = vpop.eup %2549  ;;  %v1048_v59 = vmul.f32 %v2548_v51, %v1020_v31  ;;  %v1181_v60 = vadd.f32 %v1174_v36, %v1046_v50  ;;  %v1244_v31 = vld [vmem:[#allocation2 + $0xc] sm:$0xf] }
 0x32e   :  { %v1049_v61 = vmul.f32 %v2550_v58, %v1021_v32  ;;  %v1182_v62 = vadd.f32 %v1174_v36, %v1047_v55 }
 0x32f   :  { %v1183_v63 = vadd.f32 %v1178_v53, %v1048_v59  ;;  %v2231_v1 = vpack.c.bf16 %v1181_v60, %v1181_v60 }
 0x330   :  { %v1184_v0 = vadd.f32 %v1178_v53, %v1049_v61  ;;  %v2232_v56 = vpack.c.bf16 %v1182_v62, %v1182_v62 }
 0x331   :  { %v2233_v2 = vpack.c.bf16 %v1183_v63, %v1183_v63  ;;  %v1198_v5 = vshrl.u32 %v2231_v1, 16  ;;  %v1201_v10 = vshll.u32 %v2231_v1, 16 }
 0x332   :  { %v2234_v6 = vpack.c.bf16 %v1184_v0, %v1184_v0  ;;  %v1206_v7 = vshrl.u32 %v2232_v56, 16  ;;  %v1209_v11 = vshll.u32 %v2232_v56, 16 }
 0x333   :  { %v1200_v8 = vrot.slane %v1198_v5, 7  ;;  %v1215_v9 = vshrl.u32 %v2233_v2, 16  ;;  %v1218_v24 = vshll.u32 %v2233_v2, 16 }
 0x334   :  { %v1208_v12 = vrot.slane %v1206_v7, 7  ;;  %v1223_v15 = vshrl.u32 %v2234_v6, 16  ;;  %v1226_v30 = vshll.u32 %v2234_v6, 16 }
 0x335   :  { %v1203_v20 = vor.u32 %v1201_v10, %v1200_v8  ;;  %v1204_v21 = vrot.slane %v1200_v8, 4  ;;  %v1217_v23 = vrot.slane %v1215_v9, 7 }
 0x336   :  { %v1211_v26 = vor.u32 %v1209_v11, %v1208_v12  ;;  %v1213_v27 = vrot.slane %v1208_v12, 4  ;;  %v1225_v29 = vrot.slane %v1223_v15, 7 }
 0x337   :  { %v1220_v32 = vor.u32 %v1218_v24, %v1217_v23  ;;  %v1221_v33 = vrot.slane %v1217_v23, 4  ;;  %v1238_v34 = vsel %vm2846_vm8, %v1203_v20, %v1237_v17 }
 0x338   :  { %v1212_v22 = vsel %vm2840_vm7, %v1204_v21, %v1211_v26  ;;  %v1228_v13 = vor.u32 %v1226_v30, %v1225_v29  ;;  %v1230_v16 = vrot.slane %v1225_v29, 4  ;;  %1239 = vst [vmem:[#allocation2] sm:$0xf] %v1238_v34  ;;  %v1242_v18 = vsel %vm2820_vm3, %v1213_v27, %v1241_v25  ;;  %v2509_v26 = vld [vmem:[#allocation8 + $0x8] sm:$0xff]   ;;  %v2511_v34 = vld [vmem:[#allocation8 + $0x18] sm:$0xff]  }
 0x339   :  { %1240 = vst [vmem:[#allocation2 + $0x4] sm:$0xf] %v1212_v22  ;;  %1243 = vst [vmem:[#allocation2 + $0x8] sm:$0x1] %v1242_v18  ;;  %v1245_v37 = vsel %vm2846_vm8, %v1220_v32, %v1244_v31  ;;  %v2513_v22 = vld [vmem:[#allocation8 + $0x28] sm:$0xff]   ;;  %vm3394_vm8 = vcmask 261120  }
 0x33a   :  { %v1229_v38 = vsel %vm2840_vm7, %v1221_v33, %v1228_v13  ;;  %1246 = vst [vmem:[#allocation2 + $0xc] sm:$0xf] %v1245_v37  ;;  %v1249_v39 = vsel %vm2820_vm3, %v1230_v16, %v1248_v14  ;;  %v2512_v14 = vld [vmem:[#allocation8 + $0x20] sm:$0xff]   ;;  %v2514_v13 = vld [vmem:[#allocation8 + $0x30] sm:$0xff]   ;;  %vm3392_vm3 = vcmask 130048   ;;  %vm3393_vm7 = vcmask 195584  }
 0x33b   :  { %1247 = vst [vmem:[#allocation2 + $0x10] sm:$0xf] %v1229_v38  ;;  %1250 = vst [vmem:[#allocation2 + $0x14] sm:$0x1] %v1249_v39  ;;  %v2517_v38 = vld [vmem:[#allocation8 + $0x80] sm:$0xff]  }
 0x33f   :  { %v1254_v40 = vld [vmem:[#allocation2] sm:$0xf] }
 0x340   :  { %v3159_v41 = vld [vmem:[#allocation2 + $0x4] sm:$0xf]  ;;  %v3161_v42 = vld [vmem:[#allocation2 + $0x8] sm:$0x1]  ;;  %v1277_v43 = vshrl.u32 %v1254_v40, 16  ;;  %v1280_v44 = vshll.u32 %v1254_v40, 16 }
 0x341   :  { %v1286_v45 = vshll.u32 %v3159_v41, 16  ;;  %v1290_v35 = vshrl.u32 %v3159_v41, 16  ;;  %v3165_v46 = vld [vmem:[#allocation2 + $0xc] sm:$0xf]  ;;  %v1296_v50 = vshll.u32 %v3161_v42, 16  ;;  %v2198_v30 = vcombine.low %v1254_v40, %v3159_v41 }
 0x342   :  { %v1279_v28 = vrot.slane %v1277_v43, 4  ;;  %v1282_v47 = vrot.slane %v1280_v44, 5  ;;  %v3167_v36 = vld [vmem:[#allocation2 + $0x10] sm:$0xf]  ;;  %v1275_v3 = vld [vmem:[#allocation2 + $0x14] sm:$0x1] }
 0x343   :  { %v1288_v48 = vrot.slane %v1286_v45, 5  ;;  %v1292_v49 = vrot.slane %v1290_v35, 4  ;;  %v1301_v53 = vshrl.u32 %v3165_v46, 16  ;;  %v1304_v55 = vshll.u32 %v3165_v46, 16  ;;  %v1556_v10 = vld [vmem:[#allocation2 + $0xc] sm:$0xe] }
 0x344   :  { %v1283_v51 = vor.u32 %v1282_v47, %v1279_v28  ;;  %v1310_v58 = vshll.u32 %v3167_v36, 16  ;;  %v1314_v59 = vshrl.u32 %v3167_v36, 16  ;;  %v1320_v62 = vshll.u32 %v1275_v3, 16  ;;  %v1555_v18 = vld [vmem:[#allocation2] sm:$0xe]  ;;  %v2519_v28 = vld [vmem:[#allocation8 + $0x90] sm:$0xff]  }
 0x345   :  { %v1293_v60 = vor.u32 %v1292_v49, %v1288_v48  ;;  %v1303_v61 = vrot.slane %v1301_v53, 4  ;;  %v1306_v1 = vrot.slane %v1304_v55, 5  ;;  %v1298_v5 = vrot.slane %v1296_v50, 5  ;;  %v2518_v45 = vld [vmem:[#allocation8 + $0x88] sm:$0xff]   ;;  %v2521_v47 = vld [vmem:[#allocation8 + $0xa0] sm:$0xff]  }
 0x346   :  { %v1284_v63 = vrot.slane %v1283_v51, 4  ;;  %v1312_v0 = vrot.slane %v1310_v58, 5  ;;  %v1316_v56 = vrot.slane %v1314_v59, 4  ;;  %v1322_v12 = vrot.slane %v1320_v62, 5 }
 0x347   :  { %v1294_v2 = vrot.slane %v1293_v60, 4  ;;  %v1307_v7 = vor.u32 %v1306_v1, %v1303_v61  ;;  %v1570_v20 = vrot.slane %v3167_v36, 5  ;;  %v2209_v21 = vrot.slane %v1556_v10, 9 }
 0x348   :  { %v1289_v6 = vsel %vm2882_vm11, %v1284_v63, %v1288_v48  ;;  %v1317_v8 = vor.u32 %v1316_v56, %v1312_v0  ;;  %v1573_v29 = vrot.slane %v1275_v3, 5  ;;  %v1563_v16 = vrot.slane %v3159_v41, 5  ;;  %v2220_v3 = vld [vmem:[%s3372_s5 + $0x3] ss:$0 sm:$0xff] }
 0x349   :  { %v1299_v9 = vsel %vm2882_vm11, %v1294_v2, %v1298_v5  ;;  %v1308_v15 = vrot.slane %v1307_v7, 4  ;;  %v1572_v27 = vrot.slane %v1570_v20, 4  ;;  %v1571_v31 = vsel %vm2897_vm14, %v2209_v21, %v1570_v20 }
 0x34a   :  { %v2188_v11 = vcombine.low %v1289_v6, %v1299_v9  ;;  %v1318_v17 = vrot.slane %v1317_v8, 4  ;;  %v1565_v37 = vrot.slane %v1563_v16, 4  ;;  %v2208_v39 = vrot.slane %v1555_v18, 9 }
 0x34b   :  { %v1313_v23 = vsel %vm2882_vm11, %v1308_v15, %v1312_v0  ;;  %v1574_v32 = vsel %vm2897_vm14, %v1572_v27, %v1573_v29  ;;  %v1566_v40 = vrot.slane %v3161_v42, 5  ;;  %v2199_v44 = vcombine.low %v3165_v46, %v3167_v36  ;;  %v2520_v42 = vld [vmem:[#allocation8 + $0x98] sm:$0xff]   ;;  %v2522_v46 = vld [vmem:[#allocation8 + $0xa8] sm:$0xff]  }
 0x34c   :  { %2385 = vmatprep.mubr.bf16.mxu1 %v2188_v11  ;;  %v1323_v24 = vsel %vm2882_vm11, %v1318_v17, %v1322_v12  ;;  %v2211_v33 = vcombine.low %v1571_v31, %v1574_v32  ;;  %v1564_v41 = vsel %vm2897_vm14, %v2208_v39, %v1563_v16  ;;  %v2524_v36 = vld [vmem:[#allocation8 + $0xb8] sm:$0xff]   ;;  %vm3395_vm11 = vcmask 326656  }
 0x34d   :  { %v2189_v25 = vcombine.low %v1313_v23, %v1323_v24  ;;  %v1567_v43 = vsel %vm2897_vm14, %v1565_v37, %v1566_v40 }
 0x34e   :  { %v2210_v35 = vcombine.low %v1564_v41, %v1567_v43 }
 0x34f   :  { %2386 = vmatmul.mubr.bf16.vlgmr.msra.gmra.mrb[4].mxu1 %v2189_v25 }
 0x350   :  { %2390 = vmatpush3.bf16.msra.mxu1 %v3079_v57  ;;  %2405 = vmatprep.mubr.bf16.mxu1 %v2198_v30  ;;  %v2515_v57 = vld [vmem:[#allocation8 + $0x38] sm:$0xff]  }
 0x351   :  { %2391 = vmatprep.subr.bf16.mxu1 %v2509_v26 }
 0x354   :  { %2392 = vmatpush3.bf16.msra.mxu1 %v2509_v26 }
 0x355   :  { %2393 = vmatprep.subr.bf16.mxu1 %v2510_v19 }
 0x358   :  { %2394 = vmatpush3.bf16.msra.mxu1 %v2510_v19 }
 0x359   :  { %2395 = vmatprep.subr.bf16.mxu1 %v2511_v34 }
 0x35c   :  { %2396 = vmatpush3.bf16.msra.mxu1 %v2511_v34 }
 0x35d   :  { %2397 = vmatprep.subr.bf16.mxu1 %v2512_v14 }
 0x360   :  { %2398 = vmatpush3.bf16.msra.mxu1 %v2512_v14 }
 0x361   :  { %2399 = vmatprep.subr.bf16.mxu1 %v2513_v22 }
 0x364   :  { %2400 = vmatpush3.bf16.msra.mxu1 %v2513_v22 }
 0x365   :  { %2401 = vmatprep.subr.bf16.mxu1 %v2514_v13 }
 0x368   :  { %2402 = vmatpush3.bf16.msra.mxu1 %v2514_v13 }
 0x369   :  { %2403 = vmatprep.subr.bf16.mxu1 %v2515_v57 }
 0x36c   :  { %2404 = vmatpush3.bf16.msra.mxu1 %v2515_v57 }
 0x36d   :  { %2409 = vmatprep.subr.bf16.mxu1 %v2517_v38 }
 0x36f   :  { %2406 = vmatmul.mubr.bf16.vlgmr.msra.gmra.mrb[4].mxu1 %v2199_v44 }
 0x370   :  { %2410 = vmatpush3.bf16.msra.mxu1 %v2517_v38  ;;  %2425 = vmatprep.mubr.bf16.mxu1 %v2210_v35 }
 0x371   :  { %2411 = vmatprep.subr.bf16.mxu1 %v2518_v45 }
 0x374   :  { %2412 = vmatpush3.bf16.msra.mxu1 %v2518_v45 }
 0x375   :  { %2413 = vmatprep.subr.bf16.mxu1 %v2519_v28 }
 0x378   :  { %2414 = vmatpush3.bf16.msra.mxu1 %v2519_v28 }
 0x379   :  { %2415 = vmatprep.subr.bf16.mxu1 %v2520_v42 }
 0x37c   :  { %2416 = vmatpush3.bf16.msra.mxu1 %v2520_v42 }
 0x37d   :  { %2417 = vmatprep.subr.bf16.mxu1 %v2521_v47 }
 0x380   :  { %2418 = vmatpush3.bf16.msra.mxu1 %v2521_v47 }
 0x381   :  { %2419 = vmatprep.subr.bf16.mxu1 %v2522_v46 }
 0x384   :  { %2420 = vmatpush3.bf16.msra.mxu1 %v2522_v46 }
 0x385   :  { %2421 = vmatprep.subr.bf16.mxu1 %v2523_v52 }
 0x388   :  { %2422 = vmatpush3.bf16.msra.mxu1 %v2523_v52 }
 0x389   :  { %2423 = vmatprep.subr.bf16.mxu1 %v2524_v36 }
 0x38c   :  { %2424 = vmatpush3.bf16.msra.mxu1 %v2524_v36 }
 0x38f   :  { %2426 = vmatmul.mubr.bf16.vlgmr.msra.gmra.mrb[4].mxu1 %v2211_v33 }
 0x462   :  { %v2427_v48 = vpop.f32.mrb[4].mxu1 }
 0x463   :  { %v3200_v49 = vadd.f32 %v2427_v48, %v2220_v3  ;;  %v1682_v50 = vpop.f32.mrb[5].mxu1 }
 0x464   :  { %v3202_v53 = vadd.f32 %v2220_v3, %v1682_v50  ;;  %v2428_v51 = vpop.f32.mrb[6].mxu1 }
 0x465   :  { %v3204_v55 = vadd.f32 %v2428_v51, %v2220_v3  ;;  %v1685_v58 = vpop.f32.mrb[7].mxu1  ;;  %v1787_v60 = vmul.f32 %v3200_v49, %v3200_v49 }
 0x466   :  { %v3206_v59 = vadd.f32 %v2220_v3, %v1685_v58  ;;  %v1785_v63 = vmul.f32 %v3202_v53, %v3202_v53 }
 0x467   :  { %v1716_v61 = vadd.f32 %v3204_v55, %v3200_v49  ;;  %v1788_v62 = vmul.f32 %v3204_v55, %v3204_v55 }
 0x468   :  { %v1709_v1 = vadd.f32 %v3206_v59, %v3202_v53  ;;  %v1786_v0 = vmul.f32 %v3206_v59, %v3206_v59 }
 0x469   :  { %v1717_v56 = vrot.slane %v1716_v61, 4  ;;  %v1796_v2 = vadd.f32 %v1788_v62, %v1787_v60 }
 0x46a   :  { %v1710_v5 = vrot.slane %v1709_v1, 4  ;;  %v1789_v6 = vadd.f32 %v1786_v0, %v1785_v63 }
 0x46b   :  { %v1718_v7 = vadd.f32 %v1717_v56, %v1716_v61  ;;  %v1797_v8 = vrot.slane %v1796_v2, 4 }
 0x46c   :  { %v1711_v10 = vadd.f32 %v1710_v5, %v1709_v1  ;;  %v1790_v9 = vrot.slane %v1789_v6, 4 }
 0x46d   :  { %v1719_v12 = vrot.slane %v1718_v7, 2  ;;  %v1798_v11 = vadd.f32 %v1797_v8, %v1796_v2 }
 0x46e   :  { %v1712_v15 = vrot.slane %v1711_v10, 2  ;;  %v1791_v17 = vadd.f32 %v1790_v9, %v1789_v6 }
 0x46f   :  { %v1720_v20 = vadd.f32 %v1719_v12, %v1718_v7  ;;  %v1799_v21 = vrot.slane %v1798_v11, 2 }
 0x470   :  { %v1713_v23 = vadd.f32 %v1712_v15, %v1711_v10  ;;  %v1792_v24 = vrot.slane %v1791_v17, 2 }
 0x471   :  { %v1721_v25 = vrot.slane %v1720_v20, 1  ;;  %v1800_v26 = vadd.f32 %v1799_v21, %v1798_v11 }
 0x472   :  { %v1714_v27 = vrot.slane %v1713_v23, 1  ;;  %v1793_v29 = vadd.f32 %v1792_v24, %v1791_v17 }
 0x473   :  { %v1722_v30 = vadd.f32 %v1721_v25, %v1720_v20  ;;  %v1801_v31 = vrot.slane %v1800_v26, 1 }
 0x474   :  { %v1715_v32 = vadd.f32 %v1714_v27, %v1713_v23  ;;  %v1794_v33 = vrot.slane %v1793_v29, 1 }
 0x475   :  { %v1802_v19 = vadd.f32 %v1801_v31, %v1800_v26 }
 0x476   :  { %v1723_v34 = vsel %vm80_vm0, %v1715_v32, %v1722_v30  ;;  %v1795_v14 = vadd.f32 %v1794_v33, %v1793_v29 }
 0x477   :  { %1729 = vrot.lane.b32.xlu1 %v1723_v34, %s2702_s28  ;;  %1725 = vrot.lane.b32.xlu0 %v1723_v34, %s2700_s26 }
 0x478   :  { %v1803_v22 = vsel %vm80_vm0, %v1795_v14, %v1802_v19  ;;  %vm3391_vm0 = vcmask 64512  }
 0x479   :  { %vm3396_vm14 = vmmov %vm3391_vm0 }
 0x47b   :  { %1733 = vrot.lane.b32.xlu1 %v1723_v34, %s2699_s25  ;;  %1805 = vrot.lane.b32.xlu0 %v1803_v22, %s2700_s26 }
 0x47f   :  { %1737 = vrot.lane.b32.xlu1 %v1723_v34, %s2701_s27  ;;  %1809 = vrot.lane.b32.xlu0 %v1803_v22, %s2702_s28 }
 0x483   :  { %1741 = vrot.lane.b32.xlu1 %v1723_v34, %s2703_s29  ;;  %1813 = vrot.lane.b32.xlu0 %v1803_v22, %s2699_s25 }
 0x487   :  { %1745 = vrot.lane.b32.xlu1 %v1723_v34, %s2704_s30  ;;  %1817 = vrot.lane.b32.xlu0 %v1803_v22, %s2701_s27 }
 0x48b   :  { %1749 = vrot.lane.b32.xlu1 %v1723_v34, %s2705_s9  ;;  %1821 = vrot.lane.b32.xlu0 %v1803_v22, %s2703_s29 }
 0x48f   :  { %1753 = vrot.lane.b32.xlu1 %v1723_v34, %s2692_s7  ;;  %1825 = vrot.lane.b32.xlu0 %v1803_v22, %s2704_s30 }
 0x493   :  { %1757 = vrot.lane.b32.xlu1 %v1723_v34, %s2706_s12  ;;  %1829 = vrot.lane.b32.xlu0 %v1803_v22, %s2705_s9 }
 0x497   :  { %1761 = vrot.lane.b32.xlu1 %v1723_v34, %s2707_s1  ;;  %1833 = vrot.lane.b32.xlu0 %v1803_v22, %s2692_s7 }
 0x49b   :  { %1765 = vrot.lane.b32.xlu1 %v1723_v34, %s2708_s14  ;;  %1837 = vrot.lane.b32.xlu0 %v1803_v22, %s2706_s12 }
 0x49f   :  { %1769 = vrot.lane.b32.xlu1 %v1723_v34, %s2709_s15  ;;  %1841 = vrot.lane.b32.xlu0 %v1803_v22, %s2707_s1 }
 0x4a3   :  { %1773 = vrot.lane.b32.xlu1 %v1723_v34, %s2711_s16  ;;  %1845 = vrot.lane.b32.xlu0 %v1803_v22, %s2708_s14 }
 0x4a7   :  { %1777 = vrot.lane.b32.xlu1 %v1723_v34, %s2712_s17  ;;  %1849 = vrot.lane.b32.xlu0 %v1803_v22, %s2709_s15 }
 0x4ab   :  { %1781 = vrot.lane.b32.xlu1 %v1723_v34, %s2696_s21  ;;  %1853 = vrot.lane.b32.xlu0 %v1803_v22, %s2711_s16 }
 0x4af   :  { %1861 = vrot.lane.b32.xlu1 %v1803_v22, %s2696_s21  ;;  %1857 = vrot.lane.b32.xlu0 %v1803_v22, %s2712_s17 }
 0x4e9   :  { %v1730_v13 = vpop.permute.xlu1 %1729  ;;  %v1726_v16 = vpop.permute.xlu0 %1725 }
 0x4ea   :  { %v1728_v35 = vadd.f32 %v1726_v16, %v1723_v34 }
 0x4ec   :  { %v1732_v47 = vadd.f32 %v1730_v13, %v1728_v35 }
 0x4ed   :  { %v1734_v57 = vpop.permute.xlu1 %1733  ;;  %v1806_v18 = vpop.permute.xlu0 %1805 }
 0x4ee   :  { %v1736_v36 = vadd.f32 %v1734_v57, %v1732_v47  ;;  %v1808_v3 = vadd.f32 %v1806_v18, %v1803_v22 }
 0x4f1   :  { %v1738_v37 = vpop.permute.xlu1 %1737  ;;  %v1810_v38 = vpop.permute.xlu0 %1809 }
 0x4f2   :  { %v1740_v48 = vadd.f32 %v1738_v37, %v1736_v36  ;;  %v1812_v58 = vadd.f32 %v1810_v38, %v1808_v3 }
 0x4f5   :  { %v1742_v39 = vpop.permute.xlu1 %1741  ;;  %v1814_v40 = vpop.permute.xlu0 %1813 }
 0x4f6   :  { %v1744_v60 = vadd.f32 %v1742_v39, %v1740_v48  ;;  %v1816_v61 = vadd.f32 %v1814_v40, %v1812_v58 }
 0x4f9   :  { %v1746_v43 = vpop.permute.xlu1 %1745  ;;  %v1818_v44 = vpop.permute.xlu0 %1817 }
 0x4fa   :  { %v1748_v62 = vadd.f32 %v1746_v43, %v1744_v60  ;;  %v1820_v0 = vadd.f32 %v1818_v44, %v1816_v61 }
 0x4fd   :  { %v1750_v41 = vpop.permute.xlu1 %1749  ;;  %v1822_v45 = vpop.permute.xlu0 %1821 }
 0x4fe   :  { %v1752_v56 = vadd.f32 %v1750_v41, %v1748_v62  ;;  %v1824_v2 = vadd.f32 %v1822_v45, %v1820_v0 }
 0x501   :  { %v1754_v28 = vpop.permute.xlu1 %1753  ;;  %v1826_v42 = vpop.permute.xlu0 %1825 }
 0x502   :  { %v1756_v5 = vadd.f32 %v1754_v28, %v1752_v56  ;;  %v1828_v8 = vadd.f32 %v1826_v42, %v1824_v2 }
 0x505   :  { %v1758_v46 = vpop.permute.xlu1 %1757  ;;  %v1830_v52 = vpop.permute.xlu0 %1829 }
 0x506   :  { %v1760_v10 = vadd.f32 %v1758_v46, %v1756_v5  ;;  %v1832_v9 = vadd.f32 %v1830_v52, %v1828_v8 }
 0x509   :  { %v1762_v50 = vpop.permute.xlu1 %1761  ;;  %v1834_v51 = vpop.permute.xlu0 %1833 }
 0x50a   :  { %v1764_v12 = vadd.f32 %v1762_v50, %v1760_v10  ;;  %v1836_v17 = vadd.f32 %v1834_v51, %v1832_v9 }
 0x50d   :  { %v1766_v63 = vpop.permute.xlu1 %1765  ;;  %v1838_v1 = vpop.permute.xlu0 %1837 }
 0x50e   :  { %v1768_v20 = vadd.f32 %v1766_v63, %v1764_v12  ;;  %v1840_v21 = vadd.f32 %v1838_v1, %v1836_v17 }
 0x511   :  { %v1770_v6 = vpop.permute.xlu1 %1769  ;;  %v1842_v7 = vpop.permute.xlu0 %1841 }
 0x512   :  { %v1772_v23 = vadd.f32 %v1770_v6, %v1768_v20  ;;  %v1844_v26 = vadd.f32 %v1842_v7, %v1840_v21 }
 0x515   :  { %v1774_v11 = vpop.permute.xlu1 %1773  ;;  %v1846_v15 = vpop.permute.xlu0 %1845 }
 0x516   :  { %v1776_v27 = vadd.f32 %v1774_v11, %v1772_v23  ;;  %v1848_v29 = vadd.f32 %v1846_v15, %v1844_v26 }
 0x519   :  { %v1778_v24 = vpop.permute.xlu1 %1777  ;;  %v1850_v25 = vpop.permute.xlu0 %1849 }
 0x51a   :  { %v1780_v30 = vadd.f32 %v1778_v24, %v1776_v27  ;;  %v1852_v33 = vadd.f32 %v1850_v25, %v1848_v29 }
 0x51d   :  { %v1782_v31 = vpop.permute.xlu1 %1781  ;;  %v1854_v32 = vpop.permute.xlu0 %1853 }
 0x51e   :  { %v1784_v19 = vadd.f32 %v1782_v31, %v1780_v30  ;;  %v1856_v14 = vadd.f32 %v1854_v32, %v1852_v33 }
 0x520   :  { %v3252_v34 = vmul.f32 0.00390625, %v1784_v19 }
 0x521   :  { %v1858_v22 = vpop.permute.xlu0 %1857  ;;  %v1862_v16 = vpop.permute.xlu1 %1861 }
 0x522   :  { %v1860_v13 = vadd.f32 %v1858_v22, %v1856_v14  ;;  %1873 = vrot.lane.b32.xlu0 %v3252_v34, %s2696_s21  ;;  %v1867_v18 = vmul.f32 %v3252_v34, %v3252_v34 }
 0x524   :  { %v1864_v57 = vadd.f32 %v1862_v16, %v1860_v13  ;;  %v2221_v13 = vld [vmem:[%s3372_s5 + $0x4] ss:$0 sm:$0xff] }
 0x526   :  { %v1866_v37 = vmul.f32 0.00390625, %v1864_v57  ;;  %1876 = vrot.lane.b32.xlu0 %v3252_v34, %s2712_s17 }
 0x528   :  { %v1868_v38 = vsub.f32 %v1866_v37, %v1867_v18 }
 0x52a   :  { %v1869_v39 = vmax.f32 %v1868_v38, 0.0  ;;  %1879 = vrot.lane.b32.xlu0 %v3252_v34, %s2711_s16 }
 0x52c   :  { %v1870_v40 = vadd.f32 1e-05, %v1869_v39 }
 0x52e   :  { %2551 = vrsqrt.f32 %v1870_v40  ;;  %1882 = vrot.lane.b32.xlu0 %v3252_v34, %s2709_s15 }
 0x532   :  { %1885 = vrot.lane.b32.xlu0 %v3252_v34, %s2708_s14 }
 0x536   :  { %1888 = vrot.lane.b32.xlu0 %v3252_v34, %s2707_s1 }
 0x538   :  { %v2552_v43 = vpop.eup %2551 }
 0x539   :  { %1937 = vrot.lane.b32.xlu1 %v2552_v43, %s2712_s17 }
 0x53a   :  { %1891 = vrot.lane.b32.xlu0 %v3252_v34, %s2706_s12 }
 0x53d   :  { %1940 = vrot.lane.b32.xlu1 %v2552_v43, %s2711_s16 }
 0x53e   :  { %1894 = vrot.lane.b32.xlu0 %v3252_v34, %s2692_s7 }
 0x541   :  { %1943 = vrot.lane.b32.xlu1 %v2552_v43, %s2709_s15 }
 0x542   :  { %1897 = vrot.lane.b32.xlu0 %v3252_v34, %s2705_s9 }
 0x545   :  { %1946 = vrot.lane.b32.xlu1 %v2552_v43, %s2708_s14 }
 0x546   :  { %1900 = vrot.lane.b32.xlu0 %v3252_v34, %s2704_s30 }
 0x549   :  { %1949 = vrot.lane.b32.xlu1 %v2552_v43, %s2707_s1 }
 0x54a   :  { %1934 = vrot.lane.b32.xlu0 %v2552_v43, %s2696_s21 }
 0x54d   :  { %1952 = vrot.lane.b32.xlu1 %v2552_v43, %s2706_s12 }
 0x54e   :  { %1903 = vrot.lane.b32.xlu0 %v3252_v34, %s2703_s29 }
 0x551   :  { %1955 = vrot.lane.b32.xlu1 %v2552_v43, %s2692_s7 }
 0x552   :  { %1906 = vrot.lane.b32.xlu0 %v3252_v34, %s2701_s27 }
 0x555   :  { %1958 = vrot.lane.b32.xlu1 %v2552_v43, %s2705_s9 }
 0x556   :  { %1909 = vrot.lane.b32.xlu0 %v3252_v34, %s2699_s25 }
 0x559   :  { %1961 = vrot.lane.b32.xlu1 %v2552_v43, %s2704_s30 }
 0x55a   :  { %1912 = vrot.lane.b32.xlu0 %v3252_v34, %s2702_s28 }
 0x55d   :  { %1964 = vrot.lane.b32.xlu1 %v2552_v43, %s2703_s29 }
 0x561   :  { %1967 = vrot.lane.b32.xlu1 %v2552_v43, %s2701_s27 }
 0x565   :  { %1970 = vrot.lane.b32.xlu1 %v2552_v43, %s2699_s25 }
 0x569   :  { %1973 = vrot.lane.b32.xlu1 %v2552_v43, %s2702_s28 }
 0x56d   :  { %1976 = vrot.lane.b32.xlu1 %v2552_v43, %s2700_s26 }
 0x571   :  { %1915 = vrot.lane.b32.xlu1 %v3252_v34, %s2700_s26 }
 0x594   :  { %v1874_v44 = vpop.permute.xlu0 %1873 }
 0x595   :  { %v1918_v11 = vsel %vm3396_vm14, %v3252_v34, %v1874_v44 }
 0x598   :  { %v1877_v41 = vpop.permute.xlu0 %1876 }
 0x59c   :  { %v1880_v45 = vpop.permute.xlu0 %1879 }
 0x5a0   :  { %v1883_v35 = vpop.permute.xlu0 %1882 }
 0x5a4   :  { %v1886_v28 = vpop.permute.xlu0 %1885 }
 0x5a8   :  { %v1889_v42 = vpop.permute.xlu0 %1888 }
 0x5ab   :  { %v1938_v47 = vpop.permute.xlu1 %1937 }
 0x5ac   :  { %v1892_v46 = vpop.permute.xlu0 %1891 }
 0x5af   :  { %v1941_v52 = vpop.permute.xlu1 %1940 }
 0x5b0   :  { %v1895_v36 = vpop.permute.xlu0 %1894 }
 0x5b3   :  { %v1944_v3 = vpop.permute.xlu1 %1943 }
 0x5b4   :  { %v1898_v48 = vpop.permute.xlu0 %1897 }
 0x5b7   :  { %v1947_v50 = vpop.permute.xlu1 %1946 }
 0x5b8   :  { %v1901_v51 = vpop.permute.xlu0 %1900 }
 0x5bb   :  { %v1950_v58 = vpop.permute.xlu1 %1949 }
 0x5bc   :  { %v1935_v61 = vpop.permute.xlu0 %1934 }
 0x5bd   :  { %v1979_v63 = vsel %vm3391_vm0, %v2552_v43, %v1935_v61  ;;  %vm3397_vm0 = vmmov %vm3392_vm3 }
 0x5be   :  { %v1980_v1 = vsel %vm3392_vm3, %v1979_v63, %v1938_v47  ;;  %v1919_v17 = vsel %vm3397_vm0, %v1918_v11, %v1877_v41  ;;  %vm3398_vm3 = vmmov %vm3393_vm7 }
 0x5bf   :  { %v1953_v60 = vpop.permute.xlu1 %1952  ;;  %v1981_v56 = vsel %vm3393_vm7, %v1980_v1, %v1941_v52  ;;  %v1920_v21 = vsel %vm3398_vm3, %v1919_v17, %v1880_v45  ;;  %vm3399_vm7 = vmmov %vm3394_vm8 }
 0x5c0   :  { %v1982_v5 = vsel %vm3394_vm8, %v1981_v56, %v1944_v3  ;;  %v1904_v6 = vpop.permute.xlu0 %1903  ;;  %v1921_v23 = vsel %vm3399_vm7, %v1920_v21, %v1883_v35  ;;  %vm3400_vm8 = vmmov %vm3395_vm11 }
 0x5c1   :  { %v1983_v8 = vsel %vm3395_vm11, %v1982_v5, %v1947_v50  ;;  %v1922_v25 = vsel %vm3400_vm8, %v1921_v23, %v1886_v28  ;;  %v2222_v28 = vld [vmem:[%s3372_s5 + $0x5] ss:$0 sm:$0xff]  ;;  %s2715_s5 = smov [#allocation11]  }
 0x5c2   :  { %v1984_v10 = vsel %vm856_vm2, %v1983_v8, %v1950_v58  ;;  %v1923_v29 = vsel %vm856_vm2, %v1922_v25, %v1889_v42  ;;  %s2120_s27 = sshll.u32 %s2715_s5, 4  ;;  %s2121_s27 = int_to_ptr.vmem [resolvable:$true] %s2120_s27 }
 0x5c3   :  { %v1956_v62 = vpop.permute.xlu1 %1955  ;;  %v1985_v15 = vsel %vm858_vm12, %v1984_v10, %v1953_v60  ;;  %v1924_v32 = vsel %vm858_vm12, %v1923_v29, %v1892_v46  ;;  %v2569_v29 = vld [vmem:[#allocation3] sm:$0xff]  ;;  %s2661_s28 = scalar_lea.vmem %s2121_s27, 512  ;;  %p2666_p5 = scmp.lt.s32.totalorder %s2121_s27, %s2121_s27 }
 0x5c4   :  { %v1907_v12 = vpop.permute.xlu0 %1906  ;;  %v1986_v24 = vsel %vm860_vm13, %v1985_v15, %v1956_v62  ;;  %v1925_v19 = vsel %vm860_vm13, %v1924_v32, %v1895_v36  ;;  %v2570_v32 = vld [vmem:[#allocation3 + $0x8] sm:$0xff]  ;;  %p2662_p4 = scmp.ne.s32.totalorder %s2121_s27, %s2661_s28  ;;  %p2667_p6 = scmp.lt.s32.totalorder %s2661_s28, %s2661_s28 }
 0x5c5   :  { %v1926_v14 = vsel %vm862_vm15, %v1925_v19, %v1898_v48  ;;  %v2571_v19 = vld [vmem:[#allocation3 + $0x10] sm:$0xff] }
 0x5c6   :  { %v1927_v16 = vsel %vm864_vm1, %v1926_v14, %v1901_v51  ;;  %v2572_v14 = vld [vmem:[#allocation3 + $0x18] sm:$0xff]  ;;  %p2668_p7 = por %p2667_p6, %p2666_p5 }
 0x5c7   :  { %v1959_v0 = vpop.permute.xlu1 %1958  ;;  %v1928_v37 = vsel %vm866_vm4, %v1927_v16, %v1904_v6 }
 0x5c8   :  { %v1987_v26 = vsel %vm862_vm15, %v1986_v24, %v1959_v0  ;;  %v1910_v27 = vpop.permute.xlu0 %1909  ;;  %v1929_v40 = vsel %vm868_vm9, %v1928_v37, %v1907_v12  ;;  %p2669_p8 = pnand %p2668_p7, %p2662_p4 }
 0x5c9   :  { %v1930_v44 = vsel %vm870_vm10, %v1929_v40, %v1910_v27 }
 0x5cb   :  { %v1962_v2 = vpop.permute.xlu1 %1961 }
 0x5cc   :  { %v1988_v30 = vsel %vm864_vm1, %v1987_v26, %v1962_v2  ;;  %v1913_v38 = vpop.permute.xlu0 %1912 }
 0x5cd   :  { %v1931_v41 = vsel %vm872_vm5, %v1930_v44, %v1913_v38 }
 0x5cf   :  { %v1965_v7 = vpop.permute.xlu1 %1964 }
 0x5d0   :  { %v1989_v33 = vsel %vm866_vm4, %v1988_v30, %v1965_v7 }
 0x5d3   :  { %v1968_v9 = vpop.permute.xlu1 %1967 }
 0x5d4   :  { %v1990_v34 = vsel %vm868_vm9, %v1989_v33, %v1968_v9 }
 0x5d7   :  { %v1971_v20 = vpop.permute.xlu1 %1970 }
 0x5d8   :  { %v1991_v22 = vsel %vm870_vm10, %v1990_v34, %v1971_v20 }
 0x5db   :  { %v1974_v31 = vpop.permute.xlu1 %1973 }
 0x5dc   :  { %v1992_v57 = vsel %vm872_vm5, %v1991_v22, %v1974_v31 }
 0x5df   :  { %v1977_v18 = vpop.permute.xlu1 %1976 }
 0x5e0   :  { %v1993_v39 = vsel %vm874_vm6, %v1992_v57, %v1977_v18 }
 0x5e1   :  { %v1998_v43 = vmul.f32 %v2221_v13, %v1993_v39 }
 0x5e3   :  { %v2012_v45 = vrot.slane %v1998_v43, %v3111_v54  ;;  %v1916_v35 = vpop.permute.xlu1 %1915 }
 0x5e4   :  { %v1932_v42 = vsel %vm874_vm6, %v1931_v41, %v1916_v35 }
 0x5e5   :  { %v2013_v47 = vcombine.high %v2012_v45, %v2012_v45  ;;  %v2020_v46 = vrot.slane %v2012_v45, %v3111_v54  ;;  %v1999_v52 = vmul.f32 %v1998_v43, %v1932_v42 }
 0x5e7   :  { %v2027_v36 = vrot.slane %v2013_v47, %v3111_v54  ;;  %v2004_v3 = vsub.f32 %v2222_v28, %v1999_v52  ;;  %v2031_v48 = vrot.slane %v2020_v46, %v3123_v4 }
 0x5e9   :  { %v2049_v50 = vrot.slane %v2004_v3, %v3111_v54  ;;  %v2035_v51 = vrot.slane %v2027_v36, %v3123_v4  ;;  %v2038_v61 = vmul.f32 %v2031_v48, %v3202_v53  ;;  %v2039_v62 = vmul.f32 %v2031_v48, %v3206_v59 }
 0x5eb   :  { %v2050_v58 = vcombine.high %v2049_v50, %v2049_v50  ;;  %v2057_v60 = vrot.slane %v2049_v50, %v3111_v54  ;;  %v2040_v0 = vmul.f32 %v2035_v51, %v3200_v49  ;;  %v2041_v56 = vmul.f32 %v2035_v51, %v3204_v55 }
 0x5ed   :  { %v2064_v63 = vrot.slane %v2050_v58, %v3111_v54  ;;  %v2068_v1 = vrot.slane %v2057_v60, %v3123_v4 }
 0x5ef   :  { %v2072_v2 = vrot.slane %v2064_v63, %v3123_v4  ;;  %v2075_v5 = vadd.f32 %v2068_v1, %v2038_v61  ;;  %v2076_v6 = vadd.f32 %v2068_v1, %v2039_v62 }
 0x5f1   :  { %v2223_v7 = vmul.f32 -1.442695, %v2075_v5  ;;  %v2224_v8 = vmul.f32 -1.442695, %v2076_v6  ;;  %v2077_v10 = vadd.f32 %v2072_v2, %v2040_v0  ;;  %v2078_v9 = vadd.f32 %v2072_v2, %v2041_v56 }
 0x5f3   :  { %2553 = vpow2.f32 %v2223_v7  ;;  %v2225_v53 = vmul.f32 -1.442695, %v2077_v10  ;;  %v2226_v12 = vmul.f32 -1.442695, %v2078_v9 }
 0x5f4   :  { %2555 = vpow2.f32 %v2224_v8 }
 0x5f5   :  { %2557 = vpow2.f32 %v2225_v53 }
 0x5f6   :  { %2559 = vpow2.f32 %v2226_v12 }
 0x5fd   :  { %v2554_v54 = vpop.eup %2553 }
 0x5fe   :  { %v2556_v59 = vpop.eup %2555  ;;  %v2091_v11 = vadd.f32 1.0, %v2554_v54 }
 0x5ff   :  { %v2558_v49 = vpop.eup %2557  ;;  %v2092_v15 = vadd.f32 1.0, %v2556_v59 }
 0x600   :  { %v2560_v55 = vpop.eup %2559  ;;  %2561 = vrcp.f32 %v2091_v11  ;;  %v2093_v4 = vadd.f32 1.0, %v2558_v49 }
 0x601   :  { %2563 = vrcp.f32 %v2092_v15  ;;  %v2094_v17 = vadd.f32 1.0, %v2560_v55 }
 0x602   :  { %2565 = vrcp.f32 %v2093_v4 }
 0x603   :  { %2567 = vrcp.f32 %v2094_v17 }
 0x60a   :  { %v2562_v20 = vpop.eup %2561 }
 0x60b   :  { %v2564_v21 = vpop.eup %2563  ;;  %v2103_v23 = vmul.f32 %v2562_v20, %v2075_v5 }
 0x60c   :  { %v2566_v24 = vpop.eup %2565  ;;  %v2104_v25 = vmul.f32 %v2564_v21, %v2076_v6 }
 0x60d   :  { %v2568_v26 = vpop.eup %2567  ;;  %v2105_v27 = vmul.f32 %v2566_v24, %v2077_v10  ;;  %v2107_v30 = vadd.f32 %v2569_v29, %v2103_v23 }
 0x60e   :  { %v2106_v31 = vmul.f32 %v2568_v26, %v2078_v9  ;;  %v2108_v33 = vadd.f32 %v2570_v32, %v2104_v25 }
 0x60f   :  { %v2109_v34 = vadd.f32 %v2571_v19, %v2105_v27  ;;  %2111 = vst [vmem:[#allocation11] sm:$0xff] %v2107_v30 }
 0x610   :  { %v2110_v22 = vadd.f32 %v2572_v14, %v2106_v31  ;;  %2112 = vst [vmem:[#allocation11 + $0x8] sm:$0xff] %v2108_v33 }
 0x611   :  { %2113 = vst [vmem:[#allocation11 + $0x10] sm:$0xff] %v2109_v34 }
 0x612   :  { %2114 = vst [vmem:[#allocation11 + $0x18] sm:$0xff] %v2110_v22 }
 0x613   :  { %2672 = shalt.err (!%p2669_p8)
}
 0x614   :  { %s2673_s9 = scalar_lea.hbm %s3373_s6, 512 }
 0x615   :  { %p2674_p9 = scmp.ne.s32.totalorder %s3373_s6, %s2673_s9  ;;  %p2677_p10 = scmp.lt.u32.totalorder %s2673_s9, %s3373_s6 }
 0x617   :  { %p2679_p11 = pnand %p2677_p10, %p2674_p9 }
 0x619   :  { %2682 = shalt.err (!%p2679_p11)
}
 0x61a   :  { %2126 = dma.vmem_to_hbm [thread:$0]  %s2121_s27, 512, %s3373_s6, [#allocation5], %s2695_s2, %s2695_s2, %s2696_s21  }
 0x61b   :  { %2689 = dma.done.wait [#allocation5], 512  }
 0x61c   :  { %2690 = vsyncadd [#allocation5], 4294966784 }
 0x61d   :  { %2130 = vsyncpa [#allocation4], 1 }
 0x61e   :  { %2131 = vsyncpa [#allocation7], 1 }
 0x61f   :  { %2132 = vsyncpa [#allocation10], 1 }
 0x620   :  { %2133 = vsyncpa [#allocation5], 1 }

</bundles_post_ra>
